<compile_context>
chip_gen: v5e
topology: v5e:2x2
jax: 0.10.0
libtpu: 0.0.40
codegen_flags: <defaults>
</compile_context>

<pallas_src>
import jax
import jax.numpy as jnp
import numpy as np
from jax.experimental import pallas as pl
from jax.experimental.pallas import tpu as pltpu


def fused_pool_conv_bn_kernel(w00_ref, w01_ref, w10_ref, w11_ref,
                              wmat_ref, gamma_ref, beta_ref, out_ref):
    """Fused MaxPool(2x2) + 1x1-conv matmul + BatchNorm (batch stats).

    w00..w11 : [M, Cin]   -- the four corners of every 2x2 pooling window
    wmat     : [Cin, Cb]  -- 1x1 conv weight block (Cb = Cout block)
    gamma    : [1, Cb]
    beta     : [1, Cb]
    out      : [M, Cb]
    """
    # --- max-pool: pure-VPU maximum tree over the 4 window corners -----------
    pooled = jnp.maximum(jnp.maximum(w00_ref[...], w01_ref[...]),
                         jnp.maximum(w10_ref[...], w11_ref[...]))      # [M, Cin]

    # --- 1x1 convolution == matmul on the MXU --------------------------------
    y = jnp.dot(pooled, wmat_ref[...],
                preferred_element_type=jnp.float32)                    # [M, Cb]

    # --- BatchNorm2d, training mode: biased batch stats over the M positions -
    # one-pass mean / variance, affine folded into scale/shift
    m = y.shape[0]
    inv_m = 1.0 / m
    mean = jnp.sum(y, axis=0, keepdims=True) * inv_m                   # [1, Cb]
    var = jnp.sum(y * y, axis=0, keepdims=True) * inv_m - mean * mean  # [1, Cb]
    inv_std = jax.lax.rsqrt(var + 0.001)     # eps = 1e-3 (module spec)
    scale = gamma_ref[...] * inv_std                                   # [1, Cb]
    shift = beta_ref[...] - mean * scale                               # [1, Cb]
    out_ref[...] = (y * scale + shift).astype(out_ref.dtype)


def _num_tensorcores() -> int:
    """Best-effort TensorCore-per-chip count (v7x / v4 / v5p have 2)."""
    try:
        kind = jax.devices()[0].device_kind.lower()
    except Exception:
        return 1
    if any(tag in kind for tag in ("v3", "v4", "v5p", "7")):
        return 2
    return 1


def fused_forward(x_nchw, w_conv, gamma, beta):
    """x_nchw: [N, Cin, H, W]; w_conv: [Cout, Cin] (1x1 kernel squeezed)."""
    N, Cin, H, W = x_nchw.shape
    Cout = w_conv.shape[0]

    # ceil_mode=True output size for kernel=2, stride=2, padding=0
    Ho = -(-H // 2)
    Wo = -(-W // 2)
    M = N * Ho * Wo

    # ---- glue: channels last once, pad (-inf) only if a spatial dim is odd --
    x = jnp.transpose(x_nchw, (0, 2, 3, 1))                  # [N, H, W, Cin]
    pad_h, pad_w = 2 * Ho - H, 2 * Wo - W
    if pad_h or pad_w:
        x = jnp.pad(x, ((0, 0), (0, pad_h), (0, pad_w), (0, 0)),
                    constant_values=-jnp.inf)

    # Four window corners via strided slices (no 6-D transpose im2col).
    w00 = x[:, 0::2, 0::2, :].reshape(M, Cin)
    w01 = x[:, 0::2, 1::2, :].reshape(M, Cin)
    w10 = x[:, 1::2, 0::2, :].reshape(M, Cin)
    w11 = x[:, 1::2, 1::2, :].reshape(M, Cin)

    w_mat = jnp.transpose(w_conv, (1, 0))                    # [Cin, Cout]
    gamma2 = gamma.reshape(1, Cout)
    beta2 = beta.reshape(1, Cout)

    # Split Cout across TensorCores only when the chip has >1 TC; on v5e/v6e a
    # single grid step avoids the (tiny) per-step overhead.
    if Cout > 128 and Cout % 128 == 0 and _num_tensorcores() >= 2:
        cb = 128
    else:
        cb = Cout
    n_blocks = Cout // cb

    win_spec = pl.BlockSpec((M, Cin), lambda j: (0, 0))      # resident across grid

    out_flat = pl.pallas_call(
        fused_pool_conv_bn_kernel,
        out_shape=jax.ShapeDtypeStruct((M, Cout), jnp.float32),
        grid=(n_blocks,),
        in_specs=[
            win_spec, win_spec, win_spec, win_spec,
            pl.BlockSpec((Cin, cb), lambda j: (0, j)),
            pl.BlockSpec((1, cb), lambda j: (0, j)),
            pl.BlockSpec((1, cb), lambda j: (0, j)),
        ],
        out_specs=pl.BlockSpec((M, cb), lambda j: (0, j)),
        compiler_params=pltpu.CompilerParams(
            dimension_semantics=("parallel",)),
    )(w00, w01, w10, w11, w_mat, gamma2, beta2)

    # glue: [M, Cout] -> NCHW (output transpose is tiny: N*Cout*Ho*Wo floats)
    return out_flat.reshape(N, Ho, Wo, Cout).transpose(0, 3, 1, 2)


def reference_forward(x_nchw, w_conv, gamma, beta):
    """Plain-JAX reference for correctness checking."""
    N, Cin, H, W = x_nchw.shape
    Ho, Wo = -(-H // 2), -(-W // 2)
    x = jnp.transpose(x_nchw, (0, 2, 3, 1))
    x = jnp.pad(x, ((0, 0), (0, 2 * Ho - H), (0, 2 * Wo - W), (0, 0)),
                constant_values=-jnp.inf)
    pooled = jnp.max(x.reshape(N, Ho, 2, Wo, 2, Cin), axis=(2, 4))    # [N,Ho,Wo,Cin]
    y = jnp.einsum('nhwc,oc->nhwo', pooled, w_conv)                   # [N,Ho,Wo,Cout]
    mean = jnp.mean(y, axis=(0, 1, 2), keepdims=True)
    var = jnp.mean((y - mean) ** 2, axis=(0, 1, 2), keepdims=True)
    y = (y - mean) * jax.lax.rsqrt(var + 0.001) * gamma + beta
    return jnp.transpose(y, (0, 3, 1, 2))


if __name__ == "__main__":
    key = jax.random.PRNGKey(0)
    k_x, k_w, k_g, k_b = jax.random.split(key, 4)

    # shapes implied by the module: input [1, 832, 14, 14], conv 832 -> 256
    N, Cin, H, W = 1, 832, 14, 14
    Cout = 256

    x = jax.random.normal(k_x, (N, Cin, H, W), dtype=jnp.float32)
    # Conv2d(832, 256, kernel_size=(1,1), bias=False): weight (256,832,1,1) -> (256,832)
    w_conv = jax.random.normal(k_w, (Cout, Cin), dtype=jnp.float32) * 0.02
    # BatchNorm2d(256) affine params
    gamma = 1.0 + 0.1 * jax.random.normal(k_g, (Cout,), dtype=jnp.float32)
    beta = 0.1 * jax.random.normal(k_b, (Cout,), dtype=jnp.float32)

    out = jax.block_until_ready(fused_forward(x, w_conv, gamma, beta))
    ref = jax.block_until_ready(reference_forward(x, w_conv, gamma, beta))

    assert out.shape == (N, Cout, -(-H // 2), -(-W // 2)), out.shape
    np.testing.assert_allclose(np.asarray(out), np.asarray(ref), rtol=2e-4, atol=2e-4)
    print("KERNEL_OK")
</pallas_src>

<mosaic_0001>
module attributes {stable_mosaic.version = 11 : i64} {
  func.func @fused_pool_conv_bn_kernel(%arg0: i32, %arg1: memref<49x832xf32, #tpu.memory_space<vmem>>, %arg2: memref<49x832xf32, #tpu.memory_space<vmem>>, %arg3: memref<49x832xf32, #tpu.memory_space<vmem>>, %arg4: memref<49x832xf32, #tpu.memory_space<vmem>>, %arg5: memref<832x256xf32, #tpu.memory_space<vmem>>, %arg6: memref<1x256xf32, #tpu.memory_space<vmem>>, %arg7: memref<1x256xf32, #tpu.memory_space<vmem>>, %arg8: memref<49x256xf32, #tpu.memory_space<vmem>>) attributes {dimension_semantics = [#tpu.dimension_semantics<parallel>], iteration_bounds = array<i64: 1>, scalar_prefetch = 0 : i64, scratch_operands = 0 : i64, tpu.core_type = #tpu.core_type<tc>, window_params = [{pipeline_mode = #tpu.pipeline_mode<synchronous>, transform_indices = @transform_0, window_bounds = array<i64: 49, 832>}, {pipeline_mode = #tpu.pipeline_mode<synchronous>, transform_indices = @transform_1, window_bounds = array<i64: 49, 832>}, {pipeline_mode = #tpu.pipeline_mode<synchronous>, transform_indices = @transform_2, window_bounds = array<i64: 49, 832>}, {pipeline_mode = #tpu.pipeline_mode<synchronous>, transform_indices = @transform_3, window_bounds = array<i64: 49, 832>}, {transform_indices = @transform_4, window_bounds = array<i64: 832, 256>}, {transform_indices = @transform_5, window_bounds = array<i64: 1, 256>}, {transform_indices = @transform_6, window_bounds = array<i64: 1, 256>}, {transform_indices = @transform_7, window_bounds = array<i64: 49, 256>}]} {
    %c0 = arith.constant 0 : index
    %c0_0 = arith.constant 0 : index
    %0 = vector.load %arg1[%c0, %c0_0] : memref<49x832xf32, #tpu.memory_space<vmem>>, vector<49x832xf32>
    %c0_1 = arith.constant 0 : index
    %c0_2 = arith.constant 0 : index
    %1 = vector.load %arg2[%c0_1, %c0_2] : memref<49x832xf32, #tpu.memory_space<vmem>>, vector<49x832xf32>
    %2 = arith.maximumf %0, %1 : vector<49x832xf32>
    %c0_3 = arith.constant 0 : index
    %c0_4 = arith.constant 0 : index
    %3 = vector.load %arg3[%c0_3, %c0_4] : memref<49x832xf32, #tpu.memory_space<vmem>>, vector<49x832xf32>
    %c0_5 = arith.constant 0 : index
    %c0_6 = arith.constant 0 : index
    %4 = vector.load %arg4[%c0_5, %c0_6] : memref<49x832xf32, #tpu.memory_space<vmem>>, vector<49x832xf32>
    %5 = arith.maximumf %3, %4 : vector<49x832xf32>
    %6 = arith.maximumf %2, %5 : vector<49x832xf32>
    %c0_7 = arith.constant 0 : index
    %c0_8 = arith.constant 0 : index
    %7 = vector.load %arg5[%c0_7, %c0_8] : memref<832x256xf32, #tpu.memory_space<vmem>>, vector<832x256xf32>
    %cst = arith.constant dense<0.000000e+00> : vector<49x256xf32>
    %8 = tpu.matmul %6, %7, %cst {dimension_numbers = #tpu.dot_dimension_numbers<[1], [0], [0], [1], [0, 0, 1, 1], [], []>} : vector<49x832xf32>, vector<832x256xf32>, vector<49x256xf32> -> vector<49x256xf32>
    %cst_9 = arith.constant dense<0.000000e+00> : vector<256xf32>
    %9 = vector.multi_reduction <add>, %8, %cst_9 [0] : vector<49x256xf32> to vector<256xf32>
    %10 = vector.shape_cast %9 : vector<256xf32> to vector<1x256xf32>
    %cst_10 = arith.constant 0.0204081628 : f32
    %11 = vector.broadcast %cst_10 : f32 to vector<1x256xf32>
    %12 = arith.mulf %10, %11 : vector<1x256xf32>
    %13 = arith.mulf %8, %8 : vector<49x256xf32>
    %cst_11 = arith.constant dense<0.000000e+00> : vector<256xf32>
    %14 = vector.multi_reduction <add>, %13, %cst_11 [0] : vector<49x256xf32> to vector<256xf32>
    %15 = vector.shape_cast %14 : vector<256xf32> to vector<1x256xf32>
    %cst_12 = arith.constant 0.0204081628 : f32
    %16 = vector.broadcast %cst_12 : f32 to vector<1x256xf32>
    %17 = arith.mulf %15, %16 : vector<1x256xf32>
    %18 = arith.mulf %12, %12 : vector<1x256xf32>
    %19 = arith.subf %17, %18 : vector<1x256xf32>
    %cst_13 = arith.constant 1.000000e-03 : f32
    %20 = vector.broadcast %cst_13 : f32 to vector<1x256xf32>
    %21 = arith.addf %19, %20 : vector<1x256xf32>
    %22 = math.rsqrt %21 : vector<1x256xf32>
    %c0_14 = arith.constant 0 : index
    %c0_15 = arith.constant 0 : index
    %23 = vector.load %arg6[%c0_14, %c0_15] : memref<1x256xf32, #tpu.memory_space<vmem>>, vector<1x256xf32>
    %24 = arith.mulf %23, %22 : vector<1x256xf32>
    %c0_16 = arith.constant 0 : index
    %c0_17 = arith.constant 0 : index
    %25 = vector.load %arg7[%c0_16, %c0_17] : memref<1x256xf32, #tpu.memory_space<vmem>>, vector<1x256xf32>
    %26 = arith.mulf %12, %24 : vector<1x256xf32>
    %27 = arith.subf %25, %26 : vector<1x256xf32>
    %28 = vector.broadcast %24 : vector<1x256xf32> to vector<49x256xf32>
    %29 = arith.mulf %8, %28 : vector<49x256xf32>
    %30 = vector.broadcast %27 : vector<1x256xf32> to vector<49x256xf32>
    %31 = arith.addf %29, %30 : vector<49x256xf32>
    %c0_18 = arith.constant 0 : index
    %c0_19 = arith.constant 0 : index
    %32 = vector.load %arg8[%c0_18, %c0_19] : memref<49x256xf32, #tpu.memory_space<vmem>>, vector<49x256xf32>
    tpu.vector_store %arg8[%c0_18, %c0_19], %31 {strides = array<i32>} : memref<49x256xf32, #tpu.memory_space<vmem>>, vector<49x256xf32>,
    return
  }
  func.func @transform_0(%arg0: i32) -> (i32, i32) {
    %c0_i32 = arith.constant 0 : i32
    %c0_i32_0 = arith.constant 0 : i32
    %c0_i32_1 = arith.constant 0 : i32
    return %c0_i32, %c0_i32_0 : i32, i32
  }
  func.func @transform_1(%arg0: i32) -> (i32, i32) {
    %c0_i32 = arith.constant 0 : i32
    %c0_i32_0 = arith.constant 0 : i32
    %c0_i32_1 = arith.constant 0 : i32
    return %c0_i32, %c0_i32_0 : i32, i32
  }
  func.func @transform_2(%arg0: i32) -> (i32, i32) {
    %c0_i32 = arith.constant 0 : i32
    %c0_i32_0 = arith.constant 0 : i32
    %c0_i32_1 = arith.constant 0 : i32
    return %c0_i32, %c0_i32_0 : i32, i32
  }
  func.func @transform_3(%arg0: i32) -> (i32, i32) {
    %c0_i32 = arith.constant 0 : i32
    %c0_i32_0 = arith.constant 0 : i32
    %c0_i32_1 = arith.constant 0 : i32
    return %c0_i32, %c0_i32_0 : i32, i32
  }
  func.func @transform_4(%arg0: i32) -> (i32, i32) {
    %c0_i32 = arith.constant 0 : i32
    %c0_i32_0 = arith.constant 0 : i32
    return %c0_i32, %arg0 : i32, i32
  }
  func.func @transform_5(%arg0: i32) -> (i32, i32) {
    %c0_i32 = arith.constant 0 : i32
    %c0_i32_0 = arith.constant 0 : i32
    return %c0_i32, %arg0 : i32, i32
  }
  func.func @transform_6(%arg0: i32) -> (i32, i32) {
    %c0_i32 = arith.constant 0 : i32
    %c0_i32_0 = arith.constant 0 : i32
    return %c0_i32, %arg0 : i32, i32
  }
  func.func @transform_7(%arg0: i32) -> (i32, i32) {
    %c0_i32 = arith.constant 0 : i32
    %c0_i32_0 = arith.constant 0 : i32
    return %c0_i32, %arg0 : i32, i32
  }
}

</mosaic_0001>

<bundles_post_ra>
// kernel: tpu_custom_call.1
= control target key start
LH: loop header
LB: loop body
LE: loop exit
PB: predicated region body
PF: predicated region fallthrough
CT: control target
= control target key end

     0   :  { %12 = vsyncpa [#allocation3], 0  ;;  %s2032_s0 = inlined_call_operand.hbm [shape: f32[49,832], index: 0, kind: input, shape index: {}]   ;;  %s2033_s1 = inlined_call_operand.hbm [shape: f32[49,832], index: 1, kind: input, shape index: {}]   ;;  %s2034_s2 = inlined_call_operand.hbm [shape: f32[49,832], index: 2, kind: input, shape index: {}]   ;;  %s2035_s3 = inlined_call_operand.hbm [shape: f32[49,832], index: 3, kind: input, shape index: {}]   ;;  %s2036_s4 = inlined_call_operand.hbm [shape: f32[832,256], index: 4, kind: input, shape index: {}]   ;;  %s2037_s5 = inlined_call_operand.vmem [shape: f32[1,256], index: 5, kind: input, shape index: {}]   ;;  %s2038_s6 = inlined_call_operand.vmem [shape: f32[1,256], index: 6, kind: input, shape index: {}]   ;;  %s2039_s7 = inlined_call_operand.hbm [shape: f32[49,256], index: 7, kind: output, shape index: {}]  }
   0x1   :  { %13 = vsyncpa [#allocation6], 0 }
   0x2   :  { %14 = vsyncpa [#allocation9], 0 }
   0x3   :  { %15 = vsyncpa [#allocation4], 0  ;;  %s33_s26 = sshll.u32 %s2033_s1, 4  ;;  %s1608_s27 = smov [#allocation5]   ;;  %s34_s26 = int_to_ptr.hbm [resolvable:$true] %s33_s26 }
   0x4   :  { %s35_s28 = sshll.u32 %s1608_s27, 4  ;;  %s59_s8 = sshll.u32 %s2035_s3, 4  ;;  %s36_s28 = int_to_ptr.vmem [resolvable:$true] %s35_s28  ;;  %s60_s8 = int_to_ptr.hbm [resolvable:$true] %s59_s8 }
   0x5   :  { %s1609_s9 = smov 896   ;;  %s1610_s10 = smov 56  }
   0x6   :  { %41 = dma.hbm_to_vmem [thread:$0]  %s34_s26, 6272, %s36_s28, [#allocation6], %s1609_s9, %s1609_s9, %s1610_s10  }
   0x7   :  { %s1611_s11 = smov [#allocation8]   ;;  %s20_s15 = sshll.u32 %s2032_s0, 4  ;;  %s21_s15 = int_to_ptr.hbm [resolvable:$true] %s20_s15 }
   0x8   :  { %s61_s12 = sshll.u32 %s1611_s11, 4  ;;  %s46_s17 = sshll.u32 %s2034_s2, 4  ;;  %s62_s12 = int_to_ptr.vmem [resolvable:$true] %s61_s12  ;;  %s47_s17 = int_to_ptr.hbm [resolvable:$true] %s46_s17 }
   0x9   :  { %67 = dma.hbm_to_vmem [thread:$0]  %s60_s8, 6272, %s62_s12, [#allocation9], %s1609_s9, %s1609_s9, %s1610_s10  }
   0xa   :  { %s1612_s18 = smov [#allocation2]   ;;  %s1613_s3 = smov [#allocation7]  }
   0xb   :  { %s22_s19 = sshll.u32 %s1612_s18, 4  ;;  %s48_s20 = sshll.u32 %s1613_s3, 4  ;;  %s23_s19 = int_to_ptr.vmem [resolvable:$true] %s22_s19  ;;  %s49_s20 = int_to_ptr.vmem [resolvable:$true] %s48_s20 }
   0xc   :  { %28 = dma.hbm_to_vmem [thread:$0]  %s21_s15, 6272, %s23_s19, [#allocation3], %s1609_s9, %s1609_s9, %s1610_s10  }
   0xd   :  { %s72_s23 = sshll.u32 %s2036_s4, 4  ;;  %s1614_s0 = smov [#allocation10]   ;;  %s73_s23 = int_to_ptr.hbm [resolvable:$true] %s72_s23 }
   0xe   :  { %54 = dma.hbm_to_vmem [thread:$0]  %s47_s17, 6272, %s49_s20, [#allocation6], %s1609_s9, %s1609_s9, %s1610_s10  }
   0xf   :  { %s74_s24 = sshll.u32 %s1614_s0, 4  ;;  %s1615_s25 = smov 256   ;;  %s75_s24 = int_to_ptr.vmem [resolvable:$true] %s74_s24 }
  0x10   :  { %s1616_s26 = smov 16  }
  0x11   :  { %80 = dma.hbm_to_vmem [thread:$0]  %s73_s23, 26624, %s75_s24, [#allocation9], %s1615_s25, %s1615_s25, %s1616_s26  }
  0x12   :  { %1600 = dma.done.wait [#allocation3], 6272  }
  0x13   :  { %1601 = vsyncadd [#allocation3], 4294961024 }
  0x14   :  { %1602 = dma.done.wait [#allocation6], 12544  }
  0x15   :  { %1603 = vsyncadd [#allocation6], 4294954752 }
  0x16   :  { %1604 = dma.done.wait [#allocation9], 32896  }
  0x17   :  { %1605 = vsyncadd [#allocation9], 4294934400  ;;  %v478_v0 = vld [vmem:[#allocation10 + $0xf0] sm:$0xff]  ;;  %v476_v1 = vld [vmem:[#allocation10 + $0xe0] sm:$0xff]  ;;  %vm656_vm0 = vcmask 523264   ;;  %vm1215_vm1 = vcmask 1040384  }
  0x18   :  { %v510_v2 = vld [vmem:[#allocation10 + $0x1f0] sm:$0xff]  ;;  %1410 = vmatpush.msra.mxu2 %v478_v0  ;;  %v508_v3 = vld [vmem:[#allocation10 + $0x1e0] sm:$0xff]  ;;  %678 = vmatpush.msra.mxu0 %v478_v0  ;;  %v154_v27 = vld [vmem:[#allocation5] sm:$0xff]  ;;  %s1381_s8 = sshll.u32 %s2039_s7, 4  ;;  %s1382_s8 = int_to_ptr.hbm [resolvable:$true] %s1381_s8 }
  0x19   :  { %1426 = vmatpush.msra.mxu3 %v510_v2  ;;  %v474_v4 = vld [vmem:[#allocation10 + $0xd0] sm:$0xff]  ;;  %716 = vmatpush.msra.mxu1 %v510_v2  ;;  %v472_v6 = vld [vmem:[#allocation10 + $0xc0] sm:$0xff]  ;;  %v182_v31 = vld [vmem:[#allocation5 + $0xe0] sm:$0xff] }
  0x1a   :  { %v506_v5 = vld [vmem:[#allocation10 + $0x1d0] sm:$0xff]  ;;  %1411 = vmatpush.msra.mxu2 %v476_v1  ;;  %v504_v7 = vld [vmem:[#allocation10 + $0x1c0] sm:$0xff]  ;;  %679 = vmatpush.msra.mxu0 %v476_v1  ;;  %v329_v33 = vld [vmem:[#allocation8 + $0xe0] sm:$0xff] }
  0x1b   :  { %1427 = vmatpush.msra.mxu3 %v508_v3  ;;  %717 = vmatpush.msra.mxu1 %v508_v3  ;;  %v470_v8 = vld [vmem:[#allocation10 + $0xb0] sm:$0xff]  ;;  %v468_v10 = vld [vmem:[#allocation10 + $0xa0] sm:$0xff]  ;;  %v301_v35 = vld [vmem:[#allocation8] sm:$0xff] }
  0x1c   :  { %1412 = vmatpush.msra.mxu2 %v474_v4  ;;  %v502_v9 = vld [vmem:[#allocation10 + $0x1b0] sm:$0xff]  ;;  %680 = vmatpush.msra.mxu0 %v474_v4  ;;  %v500_v11 = vld [vmem:[#allocation10 + $0x1a0] sm:$0xff]  ;;  %v134_v36 = vld [vmem:[#allocation2 + $0xe8] sm:$0xff] }
  0x1d   :  { %1428 = vmatpush.msra.mxu3 %v506_v5  ;;  %718 = vmatpush.msra.mxu1 %v506_v5  ;;  %v466_v12 = vld [vmem:[#allocation10 + $0x90] sm:$0xff]  ;;  %v464_v14 = vld [vmem:[#allocation10 + $0x80] sm:$0xff]  ;;  %v281_v38 = vld [vmem:[#allocation7 + $0xe8] sm:$0xff] }
  0x1e   :  { %1413 = vmatpush.msra.mxu2 %v472_v6  ;;  %681 = vmatpush.msra.mxu0 %v472_v6  ;;  %v498_v13 = vld [vmem:[#allocation10 + $0x190] sm:$0xff]  ;;  %v496_v15 = vld [vmem:[#allocation10 + $0x180] sm:$0xff]  ;;  %v106_v50 = vld [vmem:[#allocation2 + $0x8] sm:$0xff] }
  0x1f   :  { %1429 = vmatpush.msra.mxu3 %v504_v7  ;;  %719 = vmatpush.msra.mxu1 %v504_v7  ;;  %v462_v16 = vld [vmem:[#allocation10 + $0x70] sm:$0xff]  ;;  %v460_v18 = vld [vmem:[#allocation10 + $0x60] sm:$0xff]  ;;  %v253_v52 = vld [vmem:[#allocation7 + $0x8] sm:$0xff] }
  0x20   :  { %1414 = vmatpush.msra.mxu2 %v470_v8  ;;  %682 = vmatpush.msra.mxu0 %v470_v8  ;;  %v494_v17 = vld [vmem:[#allocation10 + $0x170] sm:$0xff]  ;;  %v492_v19 = vld [vmem:[#allocation10 + $0x160] sm:$0xff]  ;;  %v112_v4 = vld [vmem:[#allocation2 + $0x38] sm:$0xff] }
  0x21   :  { %1430 = vmatpush.msra.mxu3 %v502_v9  ;;  %720 = vmatpush.msra.mxu1 %v502_v9  ;;  %v458_v20 = vld [vmem:[#allocation10 + $0x50] sm:$0xff]  ;;  %v456_v22 = vld [vmem:[#allocation10 + $0x40] sm:$0xff]  ;;  %v259_v6 = vld [vmem:[#allocation7 + $0x38] sm:$0xff] }
  0x22   :  { %1415 = vmatpush.msra.mxu2 %v468_v10  ;;  %683 = vmatpush.msra.mxu0 %v468_v10  ;;  %v490_v21 = vld [vmem:[#allocation10 + $0x150] sm:$0xff]  ;;  %v488_v24 = vld [vmem:[#allocation10 + $0x140] sm:$0xff]  ;;  %v140_v9 = vld [vmem:[#allocation2 + $0x118] sm:$0xff] }
  0x23   :  { %1431 = vmatpush.msra.mxu3 %v500_v11  ;;  %721 = vmatpush.msra.mxu1 %v500_v11  ;;  %v454_v23 = vld [vmem:[#allocation10 + $0x30] sm:$0xff]  ;;  %v105_v26 = vld [vmem:[#allocation2] sm:$0xff] }
  0x24   :  { %1416 = vmatpush.msra.mxu2 %v466_v12  ;;  %684 = vmatpush.msra.mxu0 %v466_v12  ;;  %v486_v25 = vld [vmem:[#allocation10 + $0x130] sm:$0xff]  ;;  %v133_v28 = vld [vmem:[#allocation2 + $0xe0] sm:$0xff]  ;;  %v203_v44 = vmax.f32 %v105_v26, %v154_v27 }
  0x25   :  { %1432 = vmatpush.msra.mxu3 %v498_v13  ;;  %722 = vmatpush.msra.mxu1 %v498_v13  ;;  %v452_v29 = vld [vmem:[#allocation10 + $0x20] sm:$0xff]  ;;  %v280_v32 = vld [vmem:[#allocation7 + $0xe0] sm:$0xff]  ;;  %v231_v40 = vmax.f32 %v133_v28, %v182_v31  ;;  %v190_v13 = vld [vmem:[#allocation5 + $0x120] sm:$0xff] }
  0x26   :  { %1417 = vmatpush.msra.mxu2 %v464_v14  ;;  %685 = vmatpush.msra.mxu0 %v464_v14  ;;  %v484_v30 = vld [vmem:[#allocation10 + $0x120] sm:$0xff]  ;;  %v252_v34 = vld [vmem:[#allocation7] sm:$0xff]  ;;  %v378_v41 = vmax.f32 %v280_v32, %v329_v33  ;;  %v162_v31 = vld [vmem:[#allocation5 + $0x40] sm:$0xff] }
  0x27   :  { %1433 = vmatpush.msra.mxu3 %v496_v15  ;;  %723 = vmatpush.msra.mxu1 %v496_v15  ;;  %v183_v37 = vld [vmem:[#allocation5 + $0xe8] sm:$0xff]  ;;  %v330_v39 = vld [vmem:[#allocation8 + $0xe8] sm:$0xff]  ;;  %v350_v45 = vmax.f32 %v252_v34, %v301_v35  ;;  %v337_v15 = vld [vmem:[#allocation8 + $0x120] sm:$0xff] }
  0x28   :  { %1418 = vmatpush.msra.mxu2 %v462_v16  ;;  %686 = vmatpush.msra.mxu0 %v462_v16  ;;  %v450_v42 = vld [vmem:[#allocation10 + $0x10] sm:$0xff]  ;;  %v448_v46 = vld [vmem:[#allocation10] sm:$0xff]  ;;  %v232_v48 = vmax.f32 %v134_v36, %v183_v37  ;;  %v379_v49 = vmax.f32 %v281_v38, %v330_v39  ;;  %v1676_v56 = vmax.f32 %v231_v40, %v378_v41  ;;  %v309_v33 = vld [vmem:[#allocation8 + $0x40] sm:$0xff] }
  0x29   :  { %1434 = vmatpush.msra.mxu3 %v494_v17  ;;  %724 = vmatpush.msra.mxu1 %v494_v17  ;;  %v482_v43 = vld [vmem:[#allocation10 + $0x110] sm:$0xff]  ;;  %v480_v47 = vld [vmem:[#allocation10 + $0x100] sm:$0xff]  ;;  %v1678_v57 = vmax.f32 %v203_v44, %v350_v45  ;;  %v287_v17 = vld [vmem:[#allocation7 + $0x118] sm:$0xff] }
  0x2a   :  { %1419 = vmatpush.msra.mxu2 %v460_v18  ;;  %687 = vmatpush.msra.mxu0 %v460_v18  ;;  %v155_v51 = vld [vmem:[#allocation5 + $0x8] sm:$0xff]  ;;  %v302_v53 = vld [vmem:[#allocation8 + $0x8] sm:$0xff]  ;;  %v1680_v60 = vmax.f32 %v232_v48, %v379_v49  ;;  %v168_v49 = vld [vmem:[#allocation5 + $0x70] sm:$0xff] }
  0x2b   :  { %1435 = vmatpush.msra.mxu3 %v492_v19  ;;  %725 = vmatpush.msra.mxu1 %v492_v19  ;;  %v542_v54 = vld [vmem:[#allocation10 + $0x2f0] sm:$0xff]  ;;  %v540_v58 = vld [vmem:[#allocation10 + $0x2e0] sm:$0xff]  ;;  %v204_v61 = vmax.f32 %v106_v50, %v155_v51  ;;  %v351_v62 = vmax.f32 %v253_v52, %v302_v53  ;;  %v315_v53 = vld [vmem:[#allocation8 + $0x70] sm:$0xff] }
  0x2c   :  { %1420 = vmatpush.msra.mxu2 %v458_v20  ;;  %688 = vmatpush.msra.mxu0 %v458_v20  ;;  %v574_v55 = vld [vmem:[#allocation10 + $0x3f0] sm:$0xff]  ;;  %v572_v59 = vld [vmem:[#allocation10 + $0x3e0] sm:$0xff] }
  0x2d   :  { %1436 = vmatpush.msra.mxu3 %v490_v21  ;;  %726 = vmatpush.msra.mxu1 %v490_v21  ;;  %v538_v63 = vld [vmem:[#allocation10 + $0x2d0] sm:$0xff]  ;;  %v536_v2 = vld [vmem:[#allocation10 + $0x2c0] sm:$0xff]  ;;  %v1685_v12 = vmax.f32 %v204_v61, %v351_v62  ;;  %v148_v61 = vld [vmem:[#allocation2 + $0x158] sm:$0x1] }
  0x2e   :  { %1421 = vmatpush.msra.mxu2 %v456_v22  ;;  %689 = vmatpush.msra.mxu0 %v456_v22  ;;  %v570_v0 = vld [vmem:[#allocation10 + $0x3d0] sm:$0xff]  ;;  %v568_v3 = vld [vmem:[#allocation10 + $0x3c0] sm:$0xff] }
  0x2f   :  { %1437 = vmatpush.msra.mxu3 %v488_v24  ;;  %727 = vmatpush.msra.mxu1 %v488_v24  ;;  %v606_v1 = vld [vmem:[#allocation10 + $0x4f0] sm:$0xff]  ;;  %v161_v5 = vld [vmem:[#allocation5 + $0x38] sm:$0xff] }
  0x30   :  { %1422 = vmatpush.msra.mxu2 %v454_v23  ;;  %690 = vmatpush.msra.mxu0 %v454_v23  ;;  %v604_v7 = vld [vmem:[#allocation10 + $0x4e0] sm:$0xff]  ;;  %v308_v8 = vld [vmem:[#allocation8 + $0x38] sm:$0xff]  ;;  %v210_v22 = vmax.f32 %v112_v4, %v161_v5 }
  0x31   :  { %1438 = vmatpush.msra.mxu3 %v486_v25  ;;  %728 = vmatpush.msra.mxu1 %v486_v25  ;;  %v141_v10 = vld [vmem:[#allocation2 + $0x120] sm:$0xff]  ;;  %v534_v11 = vld [vmem:[#allocation10 + $0x2b0] sm:$0xff]  ;;  %v357_v23 = vmax.f32 %v259_v6, %v308_v8 }
  0x32   :  { %1423 = vmatpush.msra.mxu2 %v452_v29  ;;  %691 = vmatpush.msra.mxu0 %v452_v29  ;;  %v288_v14 = vld [vmem:[#allocation7 + $0x120] sm:$0xff]  ;;  %v189_v16 = vld [vmem:[#allocation5 + $0x118] sm:$0xff]  ;;  %v239_v26 = vmax.f32 %v141_v10, %v190_v13 }
  0x33   :  { %1439 = vmatpush.msra.mxu3 %v484_v30  ;;  %729 = vmatpush.msra.mxu1 %v484_v30  ;;  %v336_v18 = vld [vmem:[#allocation8 + $0x118] sm:$0xff]  ;;  %v532_v19 = vld [vmem:[#allocation10 + $0x2a0] sm:$0xff]  ;;  %v386_v27 = vmax.f32 %v288_v14, %v337_v15  ;;  %v238_v29 = vmax.f32 %v140_v9, %v189_v16  ;;  %v1688_v38 = vmax.f32 %v210_v22, %v357_v23  ;;  %v267_v16 = vld [vmem:[#allocation7 + $0x78] sm:$0xff] }
  0x34   :  { %1424 = vmatpush.msra.mxu2 %v450_v42  ;;  %692 = vmatpush.msra.mxu0 %v450_v42  ;;  %v566_v20 = vld [vmem:[#allocation10 + $0x3b0] sm:$0xff]  ;;  %v564_v24 = vld [vmem:[#allocation10 + $0x3a0] sm:$0xff]  ;;  %v385_v30 = vmax.f32 %v287_v17, %v336_v18 }
  0x35   :  { %1440 = vmatpush.msra.mxu3 %v482_v43  ;;  %730 = vmatpush.msra.mxu1 %v482_v43  ;;  %v638_v21 = vld [vmem:[#allocation10 + $0x5f0] sm:$0xff]  ;;  %v113_v28 = vld [vmem:[#allocation2 + $0x40] sm:$0xff]  ;;  %v1690_v41 = vmax.f32 %v239_v26, %v386_v27 }
  0x36   :  { %1425 = vmatpush.msra.mxu2 %v448_v46  ;;  %693 = vmatpush.msra.mxu0 %v448_v46  ;;  %v602_v25 = vld [vmem:[#allocation10 + $0x4d0] sm:$0xff]  ;;  %v636_v34 = vld [vmem:[#allocation10 + $0x5e0] sm:$0xff]  ;;  %v211_v43 = vmax.f32 %v113_v28, %v162_v31  ;;  %v1692_v45 = vmax.f32 %v238_v29, %v385_v30 }
  0x37   :  { %1441 = vmatpush.msra.mxu3 %v480_v47  ;;  %706 = vmatmul.f32.vlgmr.msra.gmra.mxu2 %v1676_v56  ;;  %v260_v32 = vld [vmem:[#allocation7 + $0x40] sm:$0xff]  ;;  %v600_v35 = vld [vmem:[#allocation10 + $0x4c0] sm:$0xff] }
  0x38   :  { %754 = vmatpush.msrb.mxu2 %v542_v54  ;;  %694 = vmatmul.f32.vlgmr.msra.gmra.mxu0 %v1678_v57  ;;  %v530_v36 = vld [vmem:[#allocation10 + $0x290] sm:$0xff]  ;;  %v528_v39 = vld [vmem:[#allocation10 + $0x280] sm:$0xff]  ;;  %v358_v44 = vmax.f32 %v260_v32, %v309_v33  ;;  %v126_v32 = vld [vmem:[#allocation2 + $0xa8] sm:$0xff] }
  0x39   :  { %792 = vmatpush.msrb.mxu3 %v574_v55  ;;  %731 = vmatpush.msra.mxu1 %v480_v47  ;;  %v562_v37 = vld [vmem:[#allocation10 + $0x390] sm:$0xff]  ;;  %v560_v42 = vld [vmem:[#allocation10 + $0x380] sm:$0xff]  ;;  %v196_v55 = vld [vmem:[#allocation5 + $0x150] sm:$0x1] }
  0x3a   :  { %755 = vmatpush.msrb.mxu2 %v540_v58  ;;  %744 = vmatmul.f32.vlgmr.msra.gmra.mxu3 %v1680_v60  ;;  %v634_v40 = vld [vmem:[#allocation10 + $0x5d0] sm:$0xff]  ;;  %v266_v50 = vld [vmem:[#allocation7 + $0x70] sm:$0xff]  ;;  %v1696_v62 = vmax.f32 %v211_v43, %v358_v44  ;;  %v303_v44 = vld [vmem:[#allocation8 + $0x10] sm:$0xff] }
  0x3b   :  { %793 = vmatpush.msrb.mxu3 %v572_v59  ;;  %830 = vmatpush.msrb.mxu0 %v606_v1  ;;  %v526_v46 = vld [vmem:[#allocation10 + $0x270] sm:$0xff]  ;;  %v632_v51 = vld [vmem:[#allocation10 + $0x5c0] sm:$0xff]  ;;  %v343_v59 = vld [vmem:[#allocation8 + $0x150] sm:$0x1]  ;;  %v364_v6 = vmax.f32 %v266_v50, %v315_v53 }
  0x3c   :  { %756 = vmatpush.msrb.mxu2 %v538_v63  ;;  %732 = vmatmul.f32.vlgmr.msra.gmra.mxu1 %v1685_v12  ;;  %v598_v47 = vld [vmem:[#allocation10 + $0x4b0] sm:$0xff]  ;;  %v294_v58 = vld [vmem:[#allocation7 + $0x150] sm:$0x1]  ;;  %v176_v50 = vld [vmem:[#allocation5 + $0xb0] sm:$0xff] }
  0x3d   :  { %794 = vmatpush.msrb.mxu3 %v570_v0  ;;  %831 = vmatpush.msrb.mxu0 %v604_v7  ;;  %v119_v48 = vld [vmem:[#allocation2 + $0x70] sm:$0xff]  ;;  %v197_v63 = vld [vmem:[#allocation5 + $0x158] sm:$0x1]  ;;  %v295_v0 = vld [vmem:[#allocation7 + $0x158] sm:$0x1]  ;;  %v392_v10 = vmax.f32 %v294_v58, %v343_v59 }
  0x3e   :  { %757 = vmatpush.msrb.mxu2 %v536_v2  ;;  %868 = vmatpush.msrb.mxu1 %v638_v21  ;;  %v558_v52 = vld [vmem:[#allocation10 + $0x370] sm:$0xff]  ;;  %v524_v2 = vld [vmem:[#allocation10 + $0x260] sm:$0xff]  ;;  %v217_v5 = vmax.f32 %v119_v48, %v168_v49  ;;  %v246_v13 = vmax.f32 %v148_v61, %v197_v63  ;;  %v323_v53 = vld [vmem:[#allocation8 + $0xb0] sm:$0xff] }
  0x3f   :  { %795 = vmatpush.msrb.mxu3 %v568_v3  ;;  %832 = vmatpush.msrb.mxu0 %v602_v25  ;;  %v147_v54 = vld [vmem:[#allocation2 + $0x150] sm:$0x1]  ;;  %v596_v3 = vld [vmem:[#allocation10 + $0x4a0] sm:$0xff]  ;;  %v255_v63 = vld [vmem:[#allocation7 + $0x18] sm:$0xff] }
  0x40   :  { %758 = vmatpush.msrb.mxu2 %v534_v11  ;;  %869 = vmatpush.msrb.mxu1 %v636_v34  ;;  %v344_v1 = vld [vmem:[#allocation8 + $0x158] sm:$0x1]  ;;  %v556_v8 = vld [vmem:[#allocation10 + $0x360] sm:$0xff]  ;;  %v245_v9 = vmax.f32 %v147_v54, %v196_v55  ;;  %v120_v11 = vld [vmem:[#allocation2 + $0x78] sm:$0xff]  ;;  %v1700_v22 = vmax.f32 %v217_v5, %v364_v6 }
  0x41   :  { %796 = vmatpush.msrb.mxu3 %v566_v20  ;;  %833 = vmatpush.msrb.mxu0 %v600_v35  ;;  %v630_v4 = vld [vmem:[#allocation10 + $0x5b0] sm:$0xff]  ;;  %v393_v14 = vmax.f32 %v295_v0, %v344_v1  ;;  %v169_v15 = vld [vmem:[#allocation5 + $0x78] sm:$0xff]  ;;  %v108_v54 = vld [vmem:[#allocation2 + $0x18] sm:$0xff] }
  0x42   :  { %759 = vmatpush.msrb.mxu2 %v532_v19  ;;  %870 = vmatpush.msrb.mxu1 %v634_v40  ;;  %v522_v7 = vld [vmem:[#allocation10 + $0x250] sm:$0xff]  ;;  %v628_v19 = vld [vmem:[#allocation10 + $0x5a0] sm:$0xff]  ;;  %v1702_v25 = vmax.f32 %v245_v9, %v392_v10  ;;  %v218_v27 = vmax.f32 %v120_v11, %v169_v15 }
  0x43   :  { %797 = vmatpush.msrb.mxu3 %v564_v24  ;;  %697 = vmatmul.f32.gmra.mxu0 %v1688_v38  ;;  %v316_v17 = vld [vmem:[#allocation8 + $0x78] sm:$0xff]  ;;  %v520_v20 = vld [vmem:[#allocation10 + $0x240] sm:$0xff]  ;;  %v1704_v29 = vmax.f32 %v246_v13, %v393_v14 }
  0x44   :  { %760 = vmatpush.msrb.mxu2 %v530_v36  ;;  %747 = vmatmul.f32.gmra.mxu3 %v1690_v41  ;;  %v594_v18 = vld [vmem:[#allocation10 + $0x490] sm:$0xff]  ;;  %v592_v23 = vld [vmem:[#allocation10 + $0x480] sm:$0xff]  ;;  %v365_v28 = vmax.f32 %v267_v16, %v316_v17  ;;  %v273_v36 = vld [vmem:[#allocation7 + $0xa8] sm:$0xff] }
  0x45   :  { %798 = vmatpush.msrb.mxu3 %v562_v37  ;;  %709 = vmatmul.f32.gmra.mxu2 %v1692_v45  ;;  %v554_v21 = vld [vmem:[#allocation10 + $0x350] sm:$0xff]  ;;  %v552_v30 = vld [vmem:[#allocation10 + $0x340] sm:$0xff] }
  0x46   :  { %761 = vmatpush.msrb.mxu2 %v528_v39  ;;  %834 = vmatpush.msrb.mxu0 %v598_v47  ;;  %v626_v24 = vld [vmem:[#allocation10 + $0x590] sm:$0xff]  ;;  %v624_v34 = vld [vmem:[#allocation10 + $0x580] sm:$0xff] }
  0x47   :  { %799 = vmatpush.msrb.mxu3 %v560_v42  ;;  %871 = vmatpush.msrb.mxu1 %v632_v51  ;;  %v518_v26 = vld [vmem:[#allocation10 + $0x230] sm:$0xff]  ;;  %v516_v35 = vld [vmem:[#allocation10 + $0x220] sm:$0xff]  ;;  %v156_v42 = vld [vmem:[#allocation5 + $0x10] sm:$0xff] }
  0x48   :  { %762 = vmatpush.msrb.mxu2 %v526_v46  ;;  %735 = vmatmul.f32.gmra.mxu1 %v1696_v62  ;;  %v590_v31 = vld [vmem:[#allocation10 + $0x470] sm:$0xff]  ;;  %v322_v37 = vld [vmem:[#allocation8 + $0xa8] sm:$0xff]  ;;  %v1708_v46 = vmax.f32 %v218_v27, %v365_v28  ;;  %v158_v27 = vld [vmem:[#allocation5 + $0x20] sm:$0xff] }
  0x49   :  { %800 = vmatpush.msrb.mxu3 %v558_v52  ;;  %835 = vmatpush.msrb.mxu0 %v596_v3  ;;  %v175_v33 = vld [vmem:[#allocation5 + $0xa8] sm:$0xff]  ;;  %v254_v43 = vld [vmem:[#allocation7 + $0x10] sm:$0xff]  ;;  %v371_v55 = vmax.f32 %v273_v36, %v322_v37  ;;  %v164_v36 = vld [vmem:[#allocation5 + $0x50] sm:$0xff] }
  0x4a   :  { %763 = vmatpush.msrb.mxu2 %v524_v2  ;;  %872 = vmatpush.msrb.mxu1 %v630_v4  ;;  %v107_v39 = vld [vmem:[#allocation2 + $0x10] sm:$0xff]  ;;  %v588_v47 = vld [vmem:[#allocation10 + $0x460] sm:$0xff]  ;;  %v224_v51 = vmax.f32 %v126_v32, %v175_v33  ;;  %v352_v59 = vmax.f32 %v254_v43, %v303_v44  ;;  %v479_v33 = vld [vmem:[#allocation10 + $0xf8] sm:$0xff] }
  0x4b   :  { %801 = vmatpush.msrb.mxu3 %v556_v8  ;;  %836 = vmatpush.msrb.mxu0 %v594_v18  ;;  %v550_v40 = vld [vmem:[#allocation10 + $0x330] sm:$0xff]  ;;  %v274_v52 = vld [vmem:[#allocation7 + $0xb0] sm:$0xff]  ;;  %v205_v58 = vmax.f32 %v107_v39, %v156_v42  ;;  %v114_v18 = vld [vmem:[#allocation2 + $0x48] sm:$0xff] }
  0x4c   :  { %764 = vmatpush.msrb.mxu2 %v522_v7  ;;  %873 = vmatpush.msrb.mxu1 %v628_v19  ;;  %v622_v48 = vld [vmem:[#allocation10 + $0x570] sm:$0xff]  ;;  %v157_v61 = vld [vmem:[#allocation5 + $0x18] sm:$0xff]  ;;  %v372_v10 = vmax.f32 %v274_v52, %v323_v53  ;;  %v1712_v14 = vmax.f32 %v224_v51, %v371_v55  ;;  %v311_v42 = vld [vmem:[#allocation8 + $0x50] sm:$0xff] }
  0x4d   :  { %802 = vmatpush.msrb.mxu3 %v554_v21  ;;  %837 = vmatpush.msrb.mxu0 %v592_v23  ;;  %v127_v49 = vld [vmem:[#allocation2 + $0xb0] sm:$0xff]  ;;  %v548_v2 = vld [vmem:[#allocation10 + $0x320] sm:$0xff]  ;;  %v206_v11 = vmax.f32 %v108_v54, %v157_v61  ;;  %v1714_v15 = vmax.f32 %v205_v58, %v352_v59  ;;  %v261_v23 = vld [vmem:[#allocation7 + $0x48] sm:$0xff] }
  0x4e   :  { %765 = vmatpush.msrb.mxu2 %v520_v20  ;;  %874 = vmatpush.msrb.mxu1 %v626_v24  ;;  %v304_v0 = vld [vmem:[#allocation8 + $0x18] sm:$0xff]  ;;  %v620_v4 = vld [vmem:[#allocation10 + $0x560] sm:$0xff]  ;;  %v225_v6 = vmax.f32 %v127_v49, %v176_v50  ;;  %v110_v43 = vld [vmem:[#allocation2 + $0x28] sm:$0xff] }
  0x4f   :  { %700 = vmatmul.f32.gmra.mxu0 %v1700_v22  ;;  %712 = vmatmul.f32.gmra.mxu2 %v1702_v25  ;;  %v514_v1 = vld [vmem:[#allocation10 + $0x210] sm:$0xff]  ;;  %v512_v5 = vld [vmem:[#allocation10 + $0x200] sm:$0xff]  ;;  %v353_v13 = vmax.f32 %v255_v63, %v304_v0  ;;  %v257_v49 = vld [vmem:[#allocation7 + $0x28] sm:$0xff] }
  0x50   :  { %750 = vmatmul.f32.gmra.mxu3 %v1704_v29  ;;  %766 = vmatpush.msrb.mxu2 %v518_v26  ;;  %v586_v3 = vld [vmem:[#allocation10 + $0x450] sm:$0xff]  ;;  %v584_v8 = vld [vmem:[#allocation10 + $0x440] sm:$0xff]  ;;  %v477_v55 = vld [vmem:[#allocation10 + $0xe8] sm:$0xff] }
  0x51   :  { %803 = vmatpush.msrb.mxu3 %v552_v30  ;;  %838 = vmatpush.msrb.mxu0 %v590_v31  ;;  %v546_v7 = vld [vmem:[#allocation10 + $0x310] sm:$0xff]  ;;  %v544_v17 = vld [vmem:[#allocation10 + $0x300] sm:$0xff]  ;;  %v305_v30 = vld [vmem:[#allocation8 + $0x20] sm:$0xff]  ;;  %v1716_v31 = vmax.f32 %v225_v6, %v372_v10  ;;  %v1718_v32 = vmax.f32 %v206_v11, %v353_v13 }
  0x52   :  { %875 = vmatpush.msrb.mxu1 %v624_v34  ;;  %767 = vmatpush.msrb.mxu2 %v516_v35  ;;  %v618_v9 = vld [vmem:[#allocation10 + $0x550] sm:$0xff]  ;;  %v616_v21 = vld [vmem:[#allocation10 + $0x540] sm:$0xff]  ;;  %v317_v10 = vld [vmem:[#allocation8 + $0x80] sm:$0xff] }
  0x53   :  { %738 = vmatmul.f32.gmra.mxu1 %v1708_v46  ;;  %804 = vmatpush.msrb.mxu3 %v550_v40  ;;  %v654_v16 = vld [vmem:[#allocation10 + $0x670] sm:$0xff]  ;;  %v310_v24 = vld [vmem:[#allocation8 + $0x48] sm:$0xff]  ;;  %v116_v11 = vld [vmem:[#allocation2 + $0x58] sm:$0xff] }
  0x54   :  { %839 = vmatpush.msrb.mxu0 %v588_v47  ;;  %876 = vmatpush.msrb.mxu1 %v622_v48  ;;  %v163_v19 = vld [vmem:[#allocation5 + $0x48] sm:$0xff]  ;;  %v109_v26 = vld [vmem:[#allocation2 + $0x20] sm:$0xff]  ;;  %v359_v39 = vmax.f32 %v261_v23, %v310_v24 }
  0x55   :  { %768 = vmatpush.msrb.mxu2 %v514_v1  ;;  %805 = vmatpush.msrb.mxu3 %v548_v2  ;;  %v582_v20 = vld [vmem:[#allocation10 + $0x430] sm:$0xff]  ;;  %v580_v34 = vld [vmem:[#allocation10 + $0x420] sm:$0xff]  ;;  %v212_v37 = vmax.f32 %v114_v18, %v163_v19  ;;  %v207_v44 = vmax.f32 %v109_v26, %v158_v27  ;;  %v543_v26 = vld [vmem:[#allocation10 + $0x2f8] sm:$0xff] }
  0x56   :  { %840 = vmatpush.msrb.mxu0 %v586_v3  ;;  %877 = vmatpush.msrb.mxu1 %v620_v4  ;;  %v256_v28 = vld [vmem:[#allocation7 + $0x20] sm:$0xff]  ;;  %v262_v40 = vld [vmem:[#allocation7 + $0x50] sm:$0xff]  ;;  %v509_v27 = vld [vmem:[#allocation10 + $0x1e8] sm:$0xff] }
  0x57   :  { %769 = vmatpush.msrb.mxu2 %v512_v5  ;;  %806 = vmatpush.msrb.mxu3 %v546_v7  ;;  %v115_v35 = vld [vmem:[#allocation2 + $0x50] sm:$0xff]  ;;  %v354_v47 = vmax.f32 %v256_v28, %v305_v30  ;;  %v306_v50 = vld [vmem:[#allocation8 + $0x28] sm:$0xff]  ;;  %v360_v61 = vmax.f32 %v262_v40, %v311_v42  ;;  %v1724_v0 = vmax.f32 %v212_v37, %v359_v39  ;;  %v170_v5 = vld [vmem:[#allocation5 + $0x80] sm:$0xff] }
  0x58   :  { %841 = vmatpush.msrb.mxu0 %v584_v8  ;;  %878 = vmatpush.msrb.mxu1 %v618_v9  ;;  %v159_v48 = vld [vmem:[#allocation5 + $0x28] sm:$0xff]  ;;  %v652_v53 = vld [vmem:[#allocation10 + $0x660] sm:$0xff]  ;;  %v213_v59 = vmax.f32 %v115_v35, %v164_v36  ;;  %v355_v2 = vmax.f32 %v257_v49, %v306_v50  ;;  %v475_v7 = vld [vmem:[#allocation10 + $0xd8] sm:$0xff] }
  0x59   :  { %703 = vmatmul.f32.gmra.mxu0 %v1712_v14  ;;  %770 = vmatmul.f32.vlgmr.msrb.gmra.mxu2 %v1714_v15  ;;  %v614_v51 = vld [vmem:[#allocation10 + $0x530] sm:$0xff]  ;;  %v612_v54 = vld [vmem:[#allocation10 + $0x520] sm:$0xff]  ;;  %v208_v1 = vmax.f32 %v110_v43, %v159_v48  ;;  %v1726_v6 = vmax.f32 %v207_v44, %v354_v47  ;;  %v511_v8 = vld [vmem:[#allocation10 + $0x1f8] sm:$0xff] }
  0x5a   :  { %914 = vmatpush.msra.mxu2 %v654_v16  ;;  %807 = vmatpush.msrb.mxu3 %v544_v17  ;;  %v578_v52 = vld [vmem:[#allocation10 + $0x410] sm:$0xff]  ;;  %v576_v58 = vld [vmem:[#allocation10 + $0x400] sm:$0xff]  ;;  %v263_v17 = vld [vmem:[#allocation7 + $0x58] sm:$0xff]  ;;  %v1728_v19 = vmax.f32 %v213_v59, %v360_v61 }
  0x5b   :  { %842 = vmatpush.msrb.mxu0 %v582_v20  ;;  %879 = vmatpush.msrb.mxu1 %v616_v21  ;;  %v610_v63 = vld [vmem:[#allocation10 + $0x510] sm:$0xff]  ;;  %v121_v4 = vld [vmem:[#allocation2 + $0x80] sm:$0xff]  ;;  %v473_v20 = vld [vmem:[#allocation10 + $0xc8] sm:$0xff]  ;;  %v1731_v24 = vmax.f32 %v208_v1, %v355_v2 }
  0x5c   :  { %741 = vmatmul.f32.gmra.mxu1 %v1716_v31  ;;  %808 = vmatmul.f32.vlgmr.msrb.gmra.mxu3 %v1718_v32  ;;  %v650_v3 = vld [vmem:[#allocation10 + $0x650] sm:$0xff]  ;;  %v608_v13 = vld [vmem:[#allocation10 + $0x500] sm:$0xff]  ;;  %v122_v21 = vld [vmem:[#allocation2 + $0x88] sm:$0xff]  ;;  %v219_v28 = vmax.f32 %v121_v4, %v170_v5 }
  0x5d   :  { %944 = vmatpush.msra.mxu3 %v479_v33  ;;  %843 = vmatpush.msrb.mxu0 %v580_v34  ;;  %v268_v9 = vld [vmem:[#allocation7 + $0x80] sm:$0xff]  ;;  %v165_v16 = vld [vmem:[#allocation5 + $0x58] sm:$0xff]  ;;  %v269_v33 = vld [vmem:[#allocation7 + $0x88] sm:$0xff] }
  0x5e   :  { %880 = vmatpush.msrb.mxu1 %v614_v51  ;;  %915 = vmatpush.msra.mxu2 %v652_v53  ;;  %v312_v18 = vld [vmem:[#allocation8 + $0x58] sm:$0xff]  ;;  %v366_v30 = vmax.f32 %v268_v9, %v317_v10  ;;  %v318_v34 = vld [vmem:[#allocation8 + $0x88] sm:$0xff]  ;;  %v214_v36 = vmax.f32 %v116_v11, %v165_v16  ;;  %v166_v39 = vld [vmem:[#allocation5 + $0x60] sm:$0xff] }
  0x5f   :  { %844 = vmatpush.msrb.mxu0 %v578_v52  ;;  %945 = vmatpush.msra.mxu3 %v477_v55  ;;  %v171_v23 = vld [vmem:[#allocation5 + $0x88] sm:$0xff]  ;;  %v117_v35 = vld [vmem:[#allocation2 + $0x60] sm:$0xff]  ;;  %v361_v37 = vmax.f32 %v263_v17, %v312_v18  ;;  %v313_v42 = vld [vmem:[#allocation8 + $0x60] sm:$0xff]  ;;  %v367_v49 = vmax.f32 %v269_v33, %v318_v34 }
  0x60   :  { %881 = vmatpush.msrb.mxu1 %v612_v54  ;;  %916 = vmatpush.msra.mxu2 %v650_v3  ;;  %v264_v40 = vld [vmem:[#allocation7 + $0x60] sm:$0xff]  ;;  %v471_v43 = vld [vmem:[#allocation10 + $0xb8] sm:$0xff]  ;;  %v541_v44 = vld [vmem:[#allocation10 + $0x2e8] sm:$0xff]  ;;  %v220_v48 = vmax.f32 %v122_v21, %v171_v23  ;;  %v1736_v53 = vmax.f32 %v219_v28, %v366_v30  ;;  %v215_v54 = vmax.f32 %v117_v35, %v166_v39 }
  0x61   :  { %845 = vmatpush.msrb.mxu0 %v576_v58  ;;  %773 = vmatmul.f32.gmra.mxu2 %v1724_v0  ;;  %v507_v47 = vld [vmem:[#allocation10 + $0x1d8] sm:$0xff]  ;;  %v469_v50 = vld [vmem:[#allocation10 + $0xa8] sm:$0xff]  ;;  %v648_v51 = vld [vmem:[#allocation10 + $0x640] sm:$0xff]  ;;  %v362_v55 = vmax.f32 %v264_v40, %v313_v42  ;;  %v1738_v1 = vmax.f32 %v214_v36, %v361_v37 }
  0x62   :  { %882 = vmatpush.msrb.mxu1 %v610_v63  ;;  %846 = vmatmul.f32.vlgmr.msrb.gmra.mxu0 %v1726_v6  ;;  %v128_v52 = vld [vmem:[#allocation2 + $0xb8] sm:$0xff]  ;;  %v177_v59 = vld [vmem:[#allocation5 + $0xb8] sm:$0xff]  ;;  %v275_v61 = vld [vmem:[#allocation7 + $0xb8] sm:$0xff] }
  0x63   :  { %946 = vmatpush.msra.mxu3 %v475_v7  ;;  %982 = vmatpush.msra.mxu0 %v511_v8  ;;  %v539_v58 = vld [vmem:[#allocation10 + $0x2d8] sm:$0xff]  ;;  %v324_v63 = vld [vmem:[#allocation8 + $0xb8] sm:$0xff]  ;;  %v505_v2 = vld [vmem:[#allocation10 + $0x1c8] sm:$0xff]  ;;  %v1743_v21 = vmax.f32 %v215_v54, %v362_v55  ;;  %v226_v23 = vmax.f32 %v128_v52, %v177_v59 }
  0x64   :  { %883 = vmatpush.msrb.mxu1 %v608_v13  ;;  %811 = vmatmul.f32.gmra.mxu3 %v1728_v19  ;;  %v467_v3 = vld [vmem:[#allocation10 + $0x98] sm:$0xff]  ;;  %v123_v4 = vld [vmem:[#allocation2 + $0x90] sm:$0xff]  ;;  %v270_v7 = vld [vmem:[#allocation7 + $0x90] sm:$0xff]  ;;  %v1740_v13 = vmax.f32 %v220_v48, %v367_v49 }
  0x65   :  { %884 = vmatmul.f32.vlgmr.msrb.gmra.mxu1 %v1731_v24  ;;  %947 = vmatpush.msra.mxu3 %v473_v20  ;;  %v172_v5 = vld [vmem:[#allocation5 + $0x90] sm:$0xff]  ;;  %v537_v8 = vld [vmem:[#allocation10 + $0x2c8] sm:$0xff]  ;;  %v129_v10 = vld [vmem:[#allocation2 + $0xc0] sm:$0xff] }
  0x66   :  { %1020 = vmatpush.msra.mxu1 %v543_v26  ;;  %983 = vmatpush.msra.mxu0 %v509_v27  ;;  %v319_v9 = vld [vmem:[#allocation8 + $0x90] sm:$0xff]  ;;  %v503_v16 = vld [vmem:[#allocation10 + $0x1b8] sm:$0xff]  ;;  %v276_v17 = vld [vmem:[#allocation7 + $0xc0] sm:$0xff]  ;;  %v373_v26 = vmax.f32 %v275_v61, %v324_v63  ;;  %v221_v33 = vmax.f32 %v123_v4, %v172_v5 }
  0x67   :  { %948 = vmatpush.msra.mxu3 %v471_v43  ;;  %917 = vmatpush.msra.mxu2 %v648_v51  ;;  %v178_v11 = vld [vmem:[#allocation5 + $0xc0] sm:$0xff]  ;;  %v325_v18 = vld [vmem:[#allocation8 + $0xc0] sm:$0xff]  ;;  %v173_v27 = vld [vmem:[#allocation5 + $0x98] sm:$0xff]  ;;  %v368_v34 = vmax.f32 %v270_v7, %v319_v9 }
  0x68   :  { %1021 = vmatpush.msra.mxu1 %v541_v44  ;;  %984 = vmatpush.msra.mxu0 %v507_v47  ;;  %v124_v20 = vld [vmem:[#allocation2 + $0x98] sm:$0xff]  ;;  %v271_v28 = vld [vmem:[#allocation7 + $0x98] sm:$0xff]  ;;  %v320_v30 = vld [vmem:[#allocation8 + $0x98] sm:$0xff]  ;;  %v227_v43 = vmax.f32 %v129_v10, %v178_v11  ;;  %v374_v44 = vmax.f32 %v276_v17, %v325_v18  ;;  %v1748_v51 = vmax.f32 %v226_v23, %v373_v26 }
  0x69   :  { %776 = vmatmul.f32.gmra.mxu2 %v1736_v53  ;;  %949 = vmatpush.msra.mxu3 %v469_v50  ;;  %v535_v35 = vld [vmem:[#allocation10 + $0x2b8] sm:$0xff]  ;;  %v465_v36 = vld [vmem:[#allocation10 + $0x88] sm:$0xff]  ;;  %v646_v37 = vld [vmem:[#allocation10 + $0x630] sm:$0xff]  ;;  %v222_v52 = vmax.f32 %v124_v20, %v173_v27  ;;  %v369_v54 = vmax.f32 %v271_v28, %v320_v30  ;;  %v1750_v61 = vmax.f32 %v221_v33, %v368_v34 }
  0x6a   :  { %849 = vmatmul.f32.gmra.mxu0 %v1738_v1  ;;  %1022 = vmatpush.msra.mxu1 %v539_v58  ;;  %v501_v39 = vld [vmem:[#allocation10 + $0x1a8] sm:$0xff]  ;;  %v463_v40 = vld [vmem:[#allocation10 + $0x78] sm:$0xff]  ;;  %v135_v48 = vld [vmem:[#allocation2 + $0xf0] sm:$0xff] }
  0x6b   :  { %985 = vmatpush.msra.mxu0 %v505_v2  ;;  %950 = vmatpush.msra.mxu3 %v467_v3  ;;  %v533_v42 = vld [vmem:[#allocation10 + $0x2a8] sm:$0xff]  ;;  %v499_v47 = vld [vmem:[#allocation10 + $0x198] sm:$0xff]  ;;  %v282_v50 = vld [vmem:[#allocation7 + $0xf0] sm:$0xff] }
  0x6c   :  { %814 = vmatmul.f32.gmra.mxu3 %v1740_v13  ;;  %1023 = vmatpush.msra.mxu1 %v537_v8  ;;  %v184_v49 = vld [vmem:[#allocation5 + $0xf0] sm:$0xff]  ;;  %v331_v55 = vld [vmem:[#allocation8 + $0xf0] sm:$0xff]  ;;  %v179_v59 = vld [vmem:[#allocation5 + $0xc8] sm:$0xff]  ;;  %v1752_v8 = vmax.f32 %v227_v43, %v374_v44 }
  0x6d   :  { %887 = vmatmul.f32.gmra.mxu1 %v1743_v21  ;;  %986 = vmatpush.msra.mxu0 %v503_v16  ;;  %v130_v58 = vld [vmem:[#allocation2 + $0xc8] sm:$0xff]  ;;  %v277_v63 = vld [vmem:[#allocation7 + $0xc8] sm:$0xff]  ;;  %v326_v2 = vld [vmem:[#allocation8 + $0xc8] sm:$0xff]  ;;  %v1755_v16 = vmax.f32 %v222_v52, %v369_v54  ;;  %v233_v17 = vmax.f32 %v135_v48, %v184_v49  ;;  %v380_v18 = vmax.f32 %v282_v50, %v331_v55 }
  0x6e   :  { %1024 = vmatpush.msra.mxu1 %v535_v35  ;;  %951 = vmatpush.msra.mxu3 %v465_v36  ;;  %v531_v3 = vld [vmem:[#allocation10 + $0x298] sm:$0xff]  ;;  %v185_v5 = vld [vmem:[#allocation5 + $0xf8] sm:$0xff]  ;;  %v283_v7 = vld [vmem:[#allocation7 + $0xf8] sm:$0xff]  ;;  %v228_v27 = vmax.f32 %v130_v58, %v179_v59  ;;  %v375_v28 = vmax.f32 %v277_v63, %v326_v2 }
  0x6f   :  { %918 = vmatpush.msra.mxu2 %v646_v37  ;;  %987 = vmatpush.msra.mxu0 %v501_v39  ;;  %v136_v4 = vld [vmem:[#allocation2 + $0xf8] sm:$0xff]  ;;  %v332_v9 = vld [vmem:[#allocation8 + $0xf8] sm:$0xff]  ;;  %v461_v10 = vld [vmem:[#allocation10 + $0x68] sm:$0xff]  ;;  %v1762_v49 = vmax.f32 %v233_v17, %v380_v18 }
  0x70   :  { %952 = vmatpush.msra.mxu3 %v463_v40  ;;  %1025 = vmatpush.msra.mxu1 %v533_v42  ;;  %v644_v11 = vld [vmem:[#allocation10 + $0x620] sm:$0xff]  ;;  %v131_v20 = vld [vmem:[#allocation2 + $0xd0] sm:$0xff]  ;;  %v180_v23 = vld [vmem:[#allocation5 + $0xd0] sm:$0xff]  ;;  %v234_v37 = vmax.f32 %v136_v4, %v185_v5  ;;  %v381_v39 = vmax.f32 %v283_v7, %v332_v9  ;;  %v1764_v63 = vmax.f32 %v228_v27, %v375_v28 }
  0x71   :  { %779 = vmatmul.f32.gmra.mxu2 %v1748_v51  ;;  %988 = vmatpush.msra.mxu0 %v499_v47  ;;  %v497_v26 = vld [vmem:[#allocation10 + $0x188] sm:$0xff]  ;;  %v278_v30 = vld [vmem:[#allocation7 + $0xd0] sm:$0xff]  ;;  %v459_v34 = vld [vmem:[#allocation10 + $0x58] sm:$0xff]  ;;  %v229_v50 = vmax.f32 %v131_v20, %v180_v23 }
  0x72   :  { %852 = vmatmul.f32.gmra.mxu0 %v1750_v61  ;;  %1026 = vmatpush.msra.mxu1 %v531_v3  ;;  %v327_v33 = vld [vmem:[#allocation8 + $0xd0] sm:$0xff]  ;;  %v495_v36 = vld [vmem:[#allocation10 + $0x178] sm:$0xff]  ;;  %v191_v42 = vld [vmem:[#allocation5 + $0x128] sm:$0xff] }
  0x73   :  { %953 = vmatpush.msra.mxu3 %v461_v10  ;;  %919 = vmatpush.msra.mxu2 %v644_v11  ;;  %v529_v35 = vld [vmem:[#allocation10 + $0x288] sm:$0xff]  ;;  %v289_v43 = vld [vmem:[#allocation7 + $0x128] sm:$0xff]  ;;  %v338_v44 = vld [vmem:[#allocation8 + $0x128] sm:$0xff]  ;;  %v376_v52 = vmax.f32 %v278_v30, %v327_v33  ;;  %v1766_v11 = vmax.f32 %v234_v37, %v381_v39 }
  0x74   :  { %817 = vmatmul.f32.gmra.mxu3 %v1752_v8  ;;  %989 = vmatpush.msra.mxu0 %v497_v26  ;;  %v1759_v40 = vld [vmem:[#allocation2 + $0x128] sm:$0xff]  ;;  %v642_v48 = vld [vmem:[#allocation10 + $0x610] sm:$0xff]  ;;  %v137_v54 = vld [vmem:[#allocation2 + $0x100] sm:$0xff]  ;;  %v387_v27 = vmax.f32 %v289_v43, %v338_v44 }
  0x75   :  { %v457_v47 = vld [vmem:[#allocation10 + $0x48] sm:$0xff]  ;;  %890 = vmatmul.f32.gmra.mxu1 %v1755_v16  ;;  %954 = vmatpush.msra.mxu3 %v459_v34  ;;  %v527_v58 = vld [vmem:[#allocation10 + $0x278] sm:$0xff]  ;;  %v284_v2 = vld [vmem:[#allocation7 + $0x100] sm:$0xff]  ;;  %2042 = vst [vmem:[#allocation16_spill] sm:$0xff] %v1766_v11  ;;  %v1769_v23 = vmax.f32 %v229_v50, %v376_v52  ;;  %v240_v26 = vmax.f32 %v1759_v40, %v191_v42 }
  0x76   :  { %v186_v55 = vld [vmem:[#allocation5 + $0x100] sm:$0xff]  ;;  %1027 = vmatpush.msra.mxu1 %v529_v35  ;;  %990 = vmatpush.msra.mxu0 %v495_v36  ;;  %v333_v3 = vld [vmem:[#allocation8 + $0x100] sm:$0xff]  ;;  %v143_v5 = vld [vmem:[#allocation2 + $0x130] sm:$0xff] }
  0x77   :  { %v493_v59 = vld [vmem:[#allocation10 + $0x168] sm:$0xff]  ;;  %v455_v4 = vld [vmem:[#allocation10 + $0x38] sm:$0xff]  ;;  %955 = vmatpush.msra.mxu3 %v457_v47  ;;  %v290_v9 = vld [vmem:[#allocation7 + $0x130] sm:$0xff]  ;;  %920 = vmatpush.msra.mxu2 %v642_v48  ;;  %2043 = vst [vmem:[#allocation17_spill] sm:$0xff] %v1769_v23  ;;  %v235_v34 = vmax.f32 %v137_v54, %v186_v55  ;;  %v382_v35 = vmax.f32 %v284_v2, %v333_v3 }
  0x78   :  { %v192_v7 = vld [vmem:[#allocation5 + $0x130] sm:$0xff]  ;;  %v525_v10 = vld [vmem:[#allocation10 + $0x268] sm:$0xff]  ;;  %1028 = vmatpush.msra.mxu1 %v527_v58  ;;  %991 = vmatpush.msra.mxu0 %v493_v59  ;;  %v187_v30 = vld [vmem:[#allocation5 + $0x108] sm:$0xff]  ;;  %v1775_v54 = vmax.f32 %v240_v26, %v387_v27 }
  0x79   :  { %v339_v17 = vld [vmem:[#allocation8 + $0x130] sm:$0xff]  ;;  %v491_v18 = vld [vmem:[#allocation10 + $0x158] sm:$0xff]  ;;  %782 = vmatmul.f32.gmra.mxu2 %v1762_v49  ;;  %956 = vmatpush.msra.mxu3 %v455_v4  ;;  %v334_v37 = vld [vmem:[#allocation8 + $0x108] sm:$0xff]  ;;  %v241_v40 = vmax.f32 %v143_v5, %v192_v7 }
  0x7a   :  { %v453_v20 = vld [vmem:[#allocation10 + $0x28] sm:$0xff]  ;;  %v523_v33 = vld [vmem:[#allocation10 + $0x258] sm:$0xff]  ;;  %855 = vmatmul.f32.gmra.mxu0 %v1764_v63  ;;  %1029 = vmatpush.msra.mxu1 %v525_v10  ;;  %v640_v39 = vld [vmem:[#allocation10 + $0x600] sm:$0xff]  ;;  %v388_v42 = vmax.f32 %v290_v9, %v339_v17 }
  0x7b   :  { %v138_v28 = vld [vmem:[#allocation2 + $0x108] sm:$0xff]  ;;  %v285_v36 = vld [vmem:[#allocation7 + $0x108] sm:$0xff]  ;;  %992 = vmatpush.msra.mxu0 %v491_v18  ;;  %957 = vmatpush.msra.mxu3 %v453_v20  ;;  %v149_v43 = vld [vmem:[#allocation2 + $0x160] sm:$0x1]  ;;  %v1777_v18 = vmax.f32 %v235_v34, %v382_v35 }
  0x7c   :  { %v489_v47 = vld [vmem:[#allocation10 + $0x148] sm:$0xff]  ;;  %v451_v48 = vld [vmem:[#allocation10 + $0x18] sm:$0xff]  ;;  %820 = vmatmul.f32.gmra.mxu3 %v1766_v11  ;;  %1030 = vmatpush.msra.mxu1 %v523_v33  ;;  %v296_v50 = vld [vmem:[#allocation7 + $0x160] sm:$0x1]  ;;  %v236_v55 = vmax.f32 %v138_v28, %v187_v30  ;;  %v383_v59 = vmax.f32 %v285_v36, %v334_v37  ;;  %v1779_v26 = vmax.f32 %v241_v40, %v388_v42 }
  0x7d   :  { %v198_v44 = vld [vmem:[#allocation5 + $0x160] sm:$0x1]  ;;  %v345_v52 = vld [vmem:[#allocation8 + $0x160] sm:$0x1]  ;;  %893 = vmatmul.f32.gmra.mxu1 %v1769_v23  ;;  %v193_v3 = vld [vmem:[#allocation5 + $0x138] sm:$0xff]  ;;  %921 = vmatpush.msra.mxu2 %v640_v39 }
  0x7e   :  { %v521_v58 = vld [vmem:[#allocation10 + $0x248] sm:$0xff]  ;;  %v144_v2 = vld [vmem:[#allocation2 + $0x138] sm:$0xff]  ;;  %v340_v7 = vld [vmem:[#allocation8 + $0x138] sm:$0xff]  ;;  %993 = vmatpush.msra.mxu0 %v489_v47  ;;  %958 = vmatpush.msra.mxu3 %v451_v48  ;;  %v1782_v34 = vmax.f32 %v236_v55, %v383_v59  ;;  %v247_v35 = vmax.f32 %v149_v43, %v198_v44  ;;  %v394_v36 = vmax.f32 %v296_v50, %v345_v52 }
  0x7f   :  { %v487_v4 = vld [vmem:[#allocation10 + $0x138] sm:$0xff]  ;;  %v449_v10 = vld [vmem:[#allocation10 + $0x8] sm:$0xff]  ;;  %v199_v20 = vld [vmem:[#allocation5 + $0x168] sm:$0x1]  ;;  %1031 = vmatpush.msra.mxu1 %v521_v58  ;;  %v242_v48 = vmax.f32 %v144_v2, %v193_v3 }
  0x80   :  { %v291_v5 = vld [vmem:[#allocation7 + $0x138] sm:$0xff]  ;;  %v519_v9 = vld [vmem:[#allocation10 + $0x238] sm:$0xff]  ;;  %v346_v23 = vld [vmem:[#allocation8 + $0x168] sm:$0x1]  ;;  %994 = vmatpush.msra.mxu0 %v487_v4  ;;  %959 = vmatpush.msra.mxu3 %v449_v10  ;;  %v1787_v59 = vmax.f32 %v247_v35, %v394_v36 }
  0x81   :  { %v150_v17 = vld [vmem:[#allocation2 + $0x168] sm:$0x1]  ;;  %v297_v33 = vld [vmem:[#allocation7 + $0x168] sm:$0x1]  ;;  %v145_v27 = vld [vmem:[#allocation2 + $0x140] sm:$0xff]  ;;  %785 = vmatmul.f32.gmra.mxu2 %v1775_v54  ;;  %1032 = vmatpush.msra.mxu1 %v519_v9  ;;  %v389_v40 = vmax.f32 %v291_v5, %v340_v7 }
  0x82   :  { %v485_v28 = vld [vmem:[#allocation10 + $0x128] sm:$0xff]  ;;  %v575_v30 = vld [vmem:[#allocation10 + $0x3f8] sm:$0xff]  ;;  %v292_v39 = vld [vmem:[#allocation7 + $0x140] sm:$0xff]  ;;  %858 = vmatmul.f32.gmra.mxu0 %v1777_v18  ;;  %v248_v43 = vmax.f32 %v150_v17, %v199_v20  ;;  %v395_v44 = vmax.f32 %v297_v33, %v346_v23 }
  0x83   :  { %v194_v37 = vld [vmem:[#allocation5 + $0x140] sm:$0xff]  ;;  %v341_v42 = vld [vmem:[#allocation8 + $0x140] sm:$0xff]  ;;  %1058 = vmatpush.msrb.mxu2 %v575_v30  ;;  %995 = vmatpush.msra.mxu0 %v485_v28  ;;  %v111_v50 = vld [vmem:[#allocation2 + $0x30] sm:$0xff] }
  0x84   :  { %v517_v47 = vld [vmem:[#allocation10 + $0x228] sm:$0xff]  ;;  %v607_v58 = vld [vmem:[#allocation10 + $0x4f8] sm:$0xff]  ;;  %823 = vmatmul.f32.gmra.mxu3 %v1779_v26  ;;  %v243_v2 = vmax.f32 %v145_v27, %v194_v37  ;;  %v390_v3 = vmax.f32 %v292_v39, %v341_v42  ;;  %v151_v5 = vld [vmem:[#allocation2 + $0x170] sm:$0x1]  ;;  %v1791_v27 = vmax.f32 %v248_v43, %v395_v44 }
  0x85   :  { %v573_v4 = vld [vmem:[#allocation10 + $0x3e8] sm:$0xff]  ;;  %1033 = vmatpush.msra.mxu1 %v517_v47  ;;  %v483_v10 = vld [vmem:[#allocation10 + $0x118] sm:$0xff]  ;;  %1096 = vmatpush.msrb.mxu3 %v607_v58  ;;  %v1789_v47 = vmax.f32 %v242_v48, %v389_v40  ;;  %v258_v17 = vld [vmem:[#allocation7 + $0x30] sm:$0xff] }
  0x86   :  { %v515_v11 = vld [vmem:[#allocation10 + $0x218] sm:$0xff]  ;;  %1059 = vmatpush.msrb.mxu2 %v573_v4  ;;  %v605_v52 = vld [vmem:[#allocation10 + $0x4e8] sm:$0xff]  ;;  %896 = vmatmul.f32.gmra.mxu1 %v1782_v34  ;;  %v298_v33 = vld [vmem:[#allocation7 + $0x170] sm:$0x1]  ;;  %v1794_v39 = vmax.f32 %v243_v2, %v390_v3 }
  0x87   :  { %v571_v55 = vld [vmem:[#allocation10 + $0x3d8] sm:$0xff]  ;;  %v481_v28 = vld [vmem:[#allocation10 + $0x108] sm:$0xff]  ;;  %996 = vmatpush.msra.mxu0 %v483_v10  ;;  %1034 = vmatpush.msra.mxu1 %v515_v11  ;;  %v201_v11 = vld [vmem:[#allocation5 + $0x178] sm:$0x1] }
  0x88   :  { %v200_v7 = vld [vmem:[#allocation5 + $0x170] sm:$0x1]  ;;  %v513_v30 = vld [vmem:[#allocation10 + $0x208] sm:$0xff]  ;;  %1097 = vmatpush.msrb.mxu3 %v605_v52  ;;  %1060 = vmatpush.msrb.mxu2 %v571_v55  ;;  %v348_v44 = vld [vmem:[#allocation8 + $0x178] sm:$0x1] }
  0x89   :  { %v160_v9 = vld [vmem:[#allocation5 + $0x30] sm:$0xff]  ;;  %v307_v23 = vld [vmem:[#allocation8 + $0x30] sm:$0xff]  ;;  %997 = vmatpush.msra.mxu0 %v481_v28  ;;  %1035 = vmatpush.msra.mxu1 %v513_v30  ;;  %v249_v10 = vmax.f32 %v151_v5, %v200_v7 }
  0x8a   :  { %v603_v20 = vld [vmem:[#allocation10 + $0x4d8] sm:$0xff]  ;;  %v347_v4 = vld [vmem:[#allocation8 + $0x170] sm:$0x1]  ;;  %788 = vmatmul.f32.gmra.mxu2 %v1787_v59  ;;  %v209_v48 = vmax.f32 %v111_v50, %v160_v9  ;;  %v356_v40 = vmax.f32 %v258_v17, %v307_v23  ;;  %861 = vmatmul.f32.gmra.mxu0 %v1789_v47  ;;  %v167_v17 = vld [vmem:[#allocation5 + $0x68] sm:$0xff] }
  0x8b   :  { %v569_v35 = vld [vmem:[#allocation10 + $0x3c8] sm:$0xff]  ;;  %v639_v36 = vld [vmem:[#allocation10 + $0x5f8] sm:$0xff]  ;;  %1098 = vmatpush.msrb.mxu3 %v603_v20  ;;  %v396_v52 = vmax.f32 %v298_v33, %v347_v4 }
  0x8c   :  { %v655_v37 = vld [vmem:[#allocation10 + $0x678] sm:$0xff]  ;;  %v299_v43 = vld [vmem:[#allocation7 + $0x178] sm:$0x1]  ;;  %1061 = vmatpush.msrb.mxu2 %v569_v35  ;;  %1134 = vmatpush.msrb.mxu0 %v639_v36  ;;  %v1799_v9 = vmax.f32 %v209_v48, %v356_v40  ;;  %v314_v35 = vld [vmem:[#allocation8 + $0x68] sm:$0xff] }
  0x8d   :  { %v152_v42 = vld [vmem:[#allocation2 + $0x178] sm:$0x1]  ;;  %v601_v55 = vld [vmem:[#allocation10 + $0x4c8] sm:$0xff]  ;;  %1180 = vmatpush.msrb.mxu1 %v655_v37  ;;  %826 = vmatmul.f32.gmra.mxu3 %v1791_v27  ;;  %v397_v7 = vmax.f32 %v299_v43, %v348_v44  ;;  %v1801_v33 = vmax.f32 %v249_v10, %v396_v52 }
  0x8e   :  { %v567_v58 = vld [vmem:[#allocation10 + $0x3b8] sm:$0xff]  ;;  %v637_v28 = vld [vmem:[#allocation10 + $0x5e8] sm:$0xff]  ;;  %899 = vmatmul.f32.gmra.mxu1 %v1794_v39  ;;  %v250_v5 = vmax.f32 %v152_v42, %v201_v11  ;;  %1099 = vmatpush.msrb.mxu3 %v601_v55  ;;  %v125_v55 = vld [vmem:[#allocation2 + $0xa0] sm:$0xff] }
  0x8f   :  { %v565_v30 = vld [vmem:[#allocation10 + $0x3a8] sm:$0xff]  ;;  %1062 = vmatpush.msrb.mxu2 %v567_v58  ;;  %v599_v2 = vld [vmem:[#allocation10 + $0x4b8] sm:$0xff]  ;;  %1135 = vmatpush.msrb.mxu0 %v637_v28 }
  0x90   :  { %v118_v50 = vld [vmem:[#allocation2 + $0x68] sm:$0xff]  ;;  %v635_v23 = vld [vmem:[#allocation10 + $0x5d8] sm:$0xff]  ;;  %1100 = vmatpush.msrb.mxu3 %v599_v2  ;;  %v1805_v42 = vmax.f32 %v250_v5, %v397_v7  ;;  %v272_v7 = vld [vmem:[#allocation7 + $0xa0] sm:$0xff] }
  0x91   :  { %v653_v3 = vld [vmem:[#allocation10 + $0x668] sm:$0xff]  ;;  %v563_v20 = vld [vmem:[#allocation10 + $0x398] sm:$0xff]  ;;  %1063 = vmatpush.msrb.mxu2 %v565_v30  ;;  %1136 = vmatpush.msrb.mxu0 %v635_v23  ;;  %v216_v11 = vmax.f32 %v118_v50, %v167_v17 }
  0x92   :  { %v265_v4 = vld [vmem:[#allocation7 + $0x68] sm:$0xff]  ;;  %v597_v36 = vld [vmem:[#allocation10 + $0x4a8] sm:$0xff]  ;;  %1181 = vmatpush.msrb.mxu1 %v653_v3  ;;  %1396 = vmatmul.msk.f32.vlgmr.msra.gmra.mxu2 %vm656_vm0, %v1799_v9 }
  0x93   :  { %v561_v37 = vld [vmem:[#allocation10 + $0x388] sm:$0xff]  ;;  %1064 = vmatpush.msrb.mxu2 %v563_v20  ;;  %v595_v40 = vld [vmem:[#allocation10 + $0x498] sm:$0xff]  ;;  %v363_v58 = vmax.f32 %v265_v4, %v314_v35  ;;  %1101 = vmatpush.msrb.mxu3 %v597_v36 }
  0x94   :  { %v633_v48 = vld [vmem:[#allocation10 + $0x5c8] sm:$0xff]  ;;  %v651_v10 = vld [vmem:[#allocation10 + $0x658] sm:$0xff]  ;;  %864 = vmatmul.f32.gmra.mxu0 %v1801_v33 }
  0x95   :  { %v631_v52 = vld [vmem:[#allocation10 + $0x5b8] sm:$0xff]  ;;  %1065 = vmatpush.msrb.mxu2 %v561_v37  ;;  %1137 = vmatpush.msrb.mxu0 %v633_v48  ;;  %v593_v43 = vld [vmem:[#allocation10 + $0x488] sm:$0xff]  ;;  %v1810_v50 = vmax.f32 %v216_v11, %v363_v58 }
  0x96   :  { %1102 = vmatpush.msrb.mxu3 %v595_v40  ;;  %v559_v44 = vld [vmem:[#allocation10 + $0x378] sm:$0xff]  ;;  %1182 = vmatpush.msrb.mxu1 %v651_v10  ;;  %v629_v28 = vld [vmem:[#allocation10 + $0x5a8] sm:$0xff]  ;;  %v181_v10 = vld [vmem:[#allocation5 + $0xd8] sm:$0xff] }
  0x97   :  { %960 = vmatmul.f32.vlgmr.msra.gmra.mxu3 %v1678_v57  ;;  %v649_v30 = vld [vmem:[#allocation10 + $0x648] sm:$0xff]  ;;  %902 = vmatmul.f32.gmra.mxu1 %v1805_v42  ;;  %v591_v3 = vld [vmem:[#allocation10 + $0x478] sm:$0xff] }
  0x98   :  { %v174_v2 = vld [vmem:[#allocation5 + $0xa0] sm:$0xff]  ;;  %1138 = vmatpush.msrb.mxu0 %v631_v52  ;;  %v321_v17 = vld [vmem:[#allocation8 + $0xa0] sm:$0xff]  ;;  %1103 = vmatpush.msrb.mxu3 %v593_v43 }
  0x99   :  { %v557_v5 = vld [vmem:[#allocation10 + $0x368] sm:$0xff]  ;;  %1066 = vmatpush.msrb.mxu2 %v559_v44  ;;  %v627_v23 = vld [vmem:[#allocation10 + $0x598] sm:$0xff]  ;;  %1183 = vmatpush.msrb.mxu1 %v649_v30  ;;  %v223_v35 = vmax.f32 %v125_v55, %v174_v2  ;;  %v370_v36 = vmax.f32 %v272_v7, %v321_v17 }
  0x9a   :  { %1139 = vmatpush.msrb.mxu0 %v629_v28  ;;  %v589_v57 = vld [vmem:[#allocation10 + $0x468] sm:$0xff]  ;;  %1104 = vmatpush.msrb.mxu3 %v591_v3  ;;  %v555_v20 = vld [vmem:[#allocation10 + $0x358] sm:$0xff]  ;;  %v328_v28 = vld [vmem:[#allocation8 + $0xd8] sm:$0xff] }
  0x9b   :  { %1067 = vmatpush.msrb.mxu2 %v557_v5  ;;  %v625_v4 = vld [vmem:[#allocation10 + $0x588] sm:$0xff]  ;;  %v587_v37 = vld [vmem:[#allocation10 + $0x458] sm:$0xff]  ;;  %v1817_v43 = vmax.f32 %v223_v35, %v370_v36 }
  0x9c   :  { %1397 = vmatmul.msk.f32.gmra.mxu2 %vm656_vm0, %v1810_v50  ;;  %1140 = vmatpush.msrb.mxu0 %v627_v23  ;;  %v647_v48 = vld [vmem:[#allocation10 + $0x638] sm:$0xff]  ;;  %v553_v11 = vld [vmem:[#allocation10 + $0x348] sm:$0xff] }
  0x9d   :  { %998 = vmatmul.f32.vlgmr.msra.gmra.mxu0 %v1685_v12  ;;  %1105 = vmatpush.msrb.mxu3 %v589_v57  ;;  %v623_v40 = vld [vmem:[#allocation10 + $0x578] sm:$0xff]  ;;  %v585_v52 = vld [vmem:[#allocation10 + $0x448] sm:$0xff]  ;;  %v139_v57 = vld [vmem:[#allocation2 + $0x110] sm:$0xff] }
  0x9e   :  { %1068 = vmatpush.msrb.mxu2 %v555_v20  ;;  %1141 = vmatpush.msrb.mxu0 %v625_v4  ;;  %v132_v58 = vld [vmem:[#allocation2 + $0xd8] sm:$0xff]  ;;  %v279_v44 = vld [vmem:[#allocation7 + $0xd8] sm:$0xff] }
  0x9f   :  { %963 = vmatmul.f32.gmra.mxu3 %v1688_v38  ;;  %1184 = vmatpush.msrb.mxu1 %v647_v48  ;;  %v551_v12 = vld [vmem:[#allocation10 + $0x338] sm:$0xff]  ;;  %v621_v55 = vld [vmem:[#allocation10 + $0x568] sm:$0xff]  ;;  %v377_v5 = vmax.f32 %v279_v44, %v328_v28 }
  0xa0   :  { %1036 = vmatmul.f32.vlgmr.msra.gmra.mxu1 %v1714_v15  ;;  %1106 = vmatpush.msrb.mxu3 %v587_v37  ;;  %v583_v30 = vld [vmem:[#allocation10 + $0x438] sm:$0xff]  ;;  %v645_v2 = vld [vmem:[#allocation10 + $0x628] sm:$0xff]  ;;  %v230_v15 = vmax.f32 %v132_v58, %v181_v10 }
  0xa1   :  { %1142 = vmatpush.msrb.mxu0 %v623_v40  ;;  %1069 = vmatpush.msrb.mxu2 %v553_v11  ;;  %v549_v3 = vld [vmem:[#allocation10 + $0x328] sm:$0xff]  ;;  %v619_v38 = vld [vmem:[#allocation10 + $0x558] sm:$0xff] }
  0xa2   :  { %1107 = vmatpush.msrb.mxu3 %v585_v52  ;;  %1185 = vmatpush.msrb.mxu1 %v645_v2  ;;  %v581_v7 = vld [vmem:[#allocation10 + $0x428] sm:$0xff]  ;;  %v547_v17 = vld [vmem:[#allocation10 + $0x318] sm:$0xff]  ;;  %v1824_v4 = vmax.f32 %v230_v15, %v377_v5  ;;  %v300_v15 = vld [vmem:[#allocation7 + $0x180] sm:$0x1] }
  0xa3   :  { %1070 = vmatpush.msrb.mxu2 %v551_v12  ;;  %1143 = vmatpush.msrb.mxu0 %v621_v55  ;;  %v617_v23 = vld [vmem:[#allocation10 + $0x548] sm:$0xff]  ;;  %v188_v20 = vld [vmem:[#allocation5 + $0x110] sm:$0xff]  ;;  %v195_v55 = vld [vmem:[#allocation5 + $0x148] sm:$0xff] }
  0xa4   :  { %1398 = vmatmul.msk.f32.gmra.mxu2 %vm656_vm0, %v1817_v43  ;;  %1108 = vmatpush.msrb.mxu3 %v583_v30  ;;  %v579_v35 = vld [vmem:[#allocation10 + $0x418] sm:$0xff]  ;;  %v545_v37 = vld [vmem:[#allocation10 + $0x308] sm:$0xff]  ;;  %v342_v30 = vld [vmem:[#allocation8 + $0x148] sm:$0xff] }
  0xa5   :  { %1001 = vmatmul.f32.gmra.mxu0 %v1696_v62  ;;  %1071 = vmatpush.msrb.mxu2 %v549_v3  ;;  %v615_v36 = vld [vmem:[#allocation10 + $0x538] sm:$0xff]  ;;  %v286_v62 = vld [vmem:[#allocation7 + $0x110] sm:$0xff]  ;;  %v335_v48 = vld [vmem:[#allocation8 + $0x110] sm:$0xff] }
  0xa6   :  { %1144 = vmatpush.msrb.mxu0 %v619_v38  ;;  %1109 = vmatpush.msrb.mxu3 %v581_v7  ;;  %v643_v40 = vld [vmem:[#allocation10 + $0x618] sm:$0xff]  ;;  %v577_v11 = vld [vmem:[#allocation10 + $0x408] sm:$0xff] }
  0xa7   :  { %966 = vmatmul.f32.gmra.mxu3 %v1700_v22  ;;  %1072 = vmatpush.msrb.mxu2 %v547_v17  ;;  %v237_v22 = vmax.f32 %v139_v57, %v188_v20  ;;  %v613_v58 = vld [vmem:[#allocation10 + $0x528] sm:$0xff]  ;;  %v611_v44 = vld [vmem:[#allocation10 + $0x518] sm:$0xff] }
  0xa8   :  { %1039 = vmatmul.f32.gmra.mxu1 %v1724_v0  ;;  %1145 = vmatpush.msrb.mxu0 %v617_v23  ;;  %v384_v0 = vmax.f32 %v286_v62, %v335_v48  ;;  %v146_v52 = vld [vmem:[#allocation2 + $0x148] sm:$0xff]  ;;  %v293_v28 = vld [vmem:[#allocation7 + $0x148] sm:$0xff] }
  0xa9   :  { %1110 = vmatpush.msrb.mxu3 %v579_v35  ;;  %1073 = vmatpush.msrb.mxu2 %v545_v37  ;;  %v641_v12 = vld [vmem:[#allocation10 + $0x608] sm:$0xff]  ;;  %v391_v2 = vmax.f32 %v293_v28, %v342_v30  ;;  %v349_v5 = vld [vmem:[#allocation8 + $0x180] sm:$0x1] }
  0xaa   :  { %1146 = vmatpush.msrb.mxu0 %v615_v36  ;;  %1186 = vmatpush.msrb.mxu1 %v643_v40  ;;  %v1831_v10 = vmax.f32 %v237_v22, %v384_v0  ;;  %v609_v3 = vld [vmem:[#allocation10 + $0x508] sm:$0xff]  ;;  %v398_v23 = vmax.f32 %v300_v15, %v349_v5 }
  0xab   :  { %1111 = vmatpush.msrb.mxu3 %v577_v11  ;;  %v202_v38 = vld [vmem:[#allocation5 + $0x180] sm:$0x1] }
  0xac   :  { %1399 = vmatmul.msk.f32.gmra.mxu2 %vm656_vm0, %v1824_v4  ;;  %1147 = vmatpush.msrb.mxu0 %v613_v58 }
  0xad   :  { %1004 = vmatmul.f32.gmra.mxu0 %v1708_v46  ;;  %1187 = vmatpush.msrb.mxu1 %v641_v12  ;;  %v244_v46 = vmax.f32 %v146_v52, %v195_v55  ;;  %v2045_v55 = vld [vmem:[#allocation17_spill] sm:$0xff] }
  0xae   :  { %1148 = vmatpush.msrb.mxu0 %v611_v44  ;;  %v2044_v44 = vld [vmem:[#allocation16_spill] sm:$0xff] }
  0xaf   :  { %969 = vmatmul.f32.gmra.mxu3 %v1712_v14  ;;  %v1838_v14 = vmax.f32 %v244_v46, %v391_v2 }
  0xb0   :  { %1042 = vmatmul.f32.gmra.mxu1 %v1736_v53  ;;  %1149 = vmatpush.msrb.mxu0 %v609_v3  ;;  %v153_v53 = vld [vmem:[#allocation2 + $0x180] sm:$0x1] }
  0xb1   :  { %v251_v17 = vmax.f32 %v153_v53, %v202_v38 }
  0xb4   :  { %1400 = vmatmul.msk.f32.gmra.mxu2 %vm656_vm0, %v1831_v10 }
  0xb5   :  { %1007 = vmatmul.f32.gmra.mxu0 %v1716_v31  ;;  %v695_v7 = vpop.f32.mrf.mxu0 }
  0xb7   :  { %972 = vmatmul.f32.gmra.mxu3 %v1676_v56 }
  0xb8   :  { %1045 = vmatmul.f32.gmra.mxu1 %v1748_v51  ;;  %v1845_v51 = vmax.f32 %v251_v17, %v398_v23 }
  0xb9   :  { %v733_v56 = vpop.f32.mrf.mxu1 }
  0xba   :  { %v707_v31 = vpop.f32.mrf.mxu2  ;;  %v734_v40 = vadd.f32 %v733_v56, %v695_v7 }
  0xbc   :  { %1401 = vmatmul.msk.f32.gmra.mxu2 %vm656_vm0, %v1838_v14 }
  0xbd   :  { %1010 = vmatmul.f32.gmra.mxu0 %v1680_v60  ;;  %v745_v57 = vpop.f32.mrf.mxu3 }
  0xbe   :  { %v1847_v20 = vadd.f32 %v745_v57, %v707_v31 }
  0xbf   :  { %975 = vmatmul.f32.gmra.mxu3 %v1692_v45 }
  0xc0   :  { %1048 = vmatmul.f32.gmra.mxu1 %v1762_v49  ;;  %v698_v35 = vpop.f32.mrf.mxu0 }
  0xc4   :  { %1402 = vmatmul.msk.f32.gmra.mxu2 %vm656_vm0, %v1845_v51 }
  0xc5   :  { %1013 = vmatmul.f32.gmra.mxu0 %v1690_v41  ;;  %v736_v60 = vpop.f32.mrf.mxu1 }
  0xc6   :  { %v737_v45 = vadd.f32 %v736_v60, %v698_v35 }
  0xc7   :  { %978 = vmatmul.f32.gmra.mxu3 %v1702_v25  ;;  %v748_v36 = vpop.f32.mrf.mxu3 }
  0xc8   :  { %1051 = vmatmul.f32.gmra.mxu1 %v1775_v54  ;;  %v710_v49 = vpop.f32.mrf.mxu2 }
  0xc9   :  { %v1856_v37 = vadd.f32 %v748_v36, %v710_v49 }
  0xcc   :  { %1074 = vmatmul.f32.vlgmr.msrb.gmra.mxu2 %v1718_v32  ;;  %v701_v62 = vpop.f32.mrf.mxu0 }
  0xcd   :  { %1016 = vmatmul.f32.gmra.mxu0 %v1704_v29 }
  0xcf   :  { %1112 = vmatmul.f32.vlgmr.msrb.gmra.mxu3 %v1726_v6 }
  0xd0   :  { %1054 = vmatmul.f32.gmra.mxu1 %v1787_v59  ;;  %v739_v41 = vpop.f32.mrf.mxu1 }
  0xd1   :  { %v740_v48 = vadd.f32 %v739_v41, %v701_v62 }
  0xd2   :  { %v713_v25 = vpop.f32.mrf.mxu2 }
  0xd3   :  { %v751_v54 = vpop.f32.mrf.mxu3 }
  0xd4   :  { %1077 = vmatmul.f32.gmra.mxu2 %v1728_v19  ;;  %v1863_v32 = vadd.f32 %v751_v54, %v713_v25 }
  0xd5   :  { %1150 = vmatmul.f32.vlgmr.msrb.gmra.mxu0 %v1731_v24 }
  0xd6   :  { %v704_v29 = vpop.f32.mrf.mxu0 }
  0xd7   :  { %1115 = vmatmul.f32.gmra.mxu3 %v1738_v1 }
  0xd8   :  { %1403 = vmatmul.msk.f32.vlgmr.msrb.gmra.mxu1 %vm656_vm0, %v1799_v9 }
  0xd9   :  { %v742_v6 = vpop.f32.mrf.mxu1 }
  0xda   :  { %v743_v59 = vadd.f32 %v742_v6, %v704_v29 }
  0xdc   :  { %1080 = vmatmul.f32.gmra.mxu2 %v1740_v13  ;;  %v771_v19 = vpop.f32.mrf.mxu2 }
  0xdd   :  { %1153 = vmatmul.f32.gmra.mxu0 %v1743_v21  ;;  %v772_v24 = vadd.f32 %v771_v19, %v734_v40 }
  0xdf   :  { %1118 = vmatmul.f32.gmra.mxu3 %v1750_v61  ;;  %v809_v1 = vpop.f32.mrf.mxu3  ;;  %v847_v11 = vpop.f32.mrf.mxu0 }
  0xe0   :  { %1404 = vmatmul.msk.f32.gmra.mxu1 %vm656_vm0, %v1810_v50  ;;  %v810_v22 = vadd.f32 %v809_v1, %v772_v24 }
  0xe2   :  { %v848_v9 = vadd.f32 %v847_v11, %v810_v22  ;;  %v885_v0 = vpop.f32.mrf.mxu1 }
  0xe4   :  { %1083 = vmatmul.f32.gmra.mxu2 %v1752_v8  ;;  %v1874_v13 = vadd.f32 %v885_v0, %v848_v9  ;;  %v774_v21 = vpop.f32.mrf.mxu2 }
  0xe5   :  { %1156 = vmatmul.f32.gmra.mxu0 %v1755_v16  ;;  %v775_v61 = vadd.f32 %v774_v21, %v737_v45 }
  0xe7   :  { %1121 = vmatmul.f32.gmra.mxu3 %v1764_v63  ;;  %v812_v58 = vpop.f32.mrf.mxu3  ;;  %v850_v50 = vpop.f32.mrf.mxu0 }
  0xe8   :  { %1405 = vmatmul.msk.f32.gmra.mxu1 %vm656_vm0, %v1817_v43  ;;  %v813_v52 = vadd.f32 %v812_v58, %v775_v61 }
  0xea   :  { %v851_v12 = vadd.f32 %v850_v50, %v813_v52  ;;  %v888_v8 = vpop.f32.mrf.mxu1 }
  0xec   :  { %1086 = vmatmul.f32.gmra.mxu2 %v2044_v44  ;;  %v889_v28 = vadd.f32 %v888_v8, %v851_v12  ;;  %v777_v16 = vpop.f32.mrf.mxu2 }
  0xed   :  { %1159 = vmatmul.f32.gmra.mxu0 %v2045_v55  ;;  %v778_v30 = vadd.f32 %v777_v16, %v740_v48 }
  0xef   :  { %1124 = vmatmul.f32.gmra.mxu3 %v1777_v18  ;;  %v815_v63 = vpop.f32.mrf.mxu3  ;;  %v853_v46 = vpop.f32.mrf.mxu0 }
  0xf0   :  { %1406 = vmatmul.msk.f32.gmra.mxu1 %vm656_vm0, %v1824_v4  ;;  %v816_v43 = vadd.f32 %v815_v63, %v778_v30 }
  0xf2   :  { %v854_v2 = vadd.f32 %v853_v46, %v816_v43  ;;  %v891_v3 = vpop.f32.mrf.mxu1 }
  0xf4   :  { %1089 = vmatmul.f32.gmra.mxu2 %v1779_v26  ;;  %v892_v53 = vadd.f32 %v891_v3, %v854_v2  ;;  %v780_v38 = vpop.f32.mrf.mxu2 }
  0xf5   :  { %1162 = vmatmul.f32.gmra.mxu0 %v1782_v34  ;;  %v781_v15 = vadd.f32 %v780_v38, %v743_v59 }
  0xf7   :  { %1127 = vmatmul.f32.gmra.mxu3 %v1789_v47  ;;  %v818_v18 = vpop.f32.mrf.mxu3  ;;  %v856_v5 = vpop.f32.mrf.mxu0 }
  0xf8   :  { %1407 = vmatmul.msk.f32.gmra.mxu1 %vm656_vm0, %v1831_v10  ;;  %v819_v4 = vadd.f32 %v818_v18, %v781_v15 }
  0xfa   :  { %v857_v7 = vadd.f32 %v856_v5, %v819_v4  ;;  %v894_v17 = vpop.f32.mrf.mxu1 }
  0xfc   :  { %1092 = vmatmul.f32.gmra.mxu2 %v1791_v27  ;;  %v895_v26 = vadd.f32 %v894_v17, %v857_v7  ;;  %v783_v34 = vpop.f32.mrf.mxu2 }
  0xfd   :  { %1165 = vmatmul.f32.gmra.mxu0 %v1794_v39  ;;  %v784_v47 = vadd.f32 %v783_v34, %v1847_v20 }
  0xff   :  { %1130 = vmatmul.f32.gmra.mxu3 %v1801_v33  ;;  %v821_v23 = vpop.f32.mrf.mxu3  ;;  %v859_v10 = vpop.f32.mrf.mxu0 }
 0x100   :  { %1408 = vmatmul.msk.f32.gmra.mxu1 %vm656_vm0, %v1838_v14  ;;  %v822_v31 = vadd.f32 %v821_v23, %v784_v47 }
 0x102   :  { %v860_v56 = vadd.f32 %v859_v10, %v822_v31 }
 0x103   :  { %v897_v57 = vpop.f32.mrf.mxu1 }
 0x104   :  { %v898_v27 = vadd.f32 %v897_v57, %v860_v56  ;;  %v786_v35 = vpop.f32.mrf.mxu2 }
 0x105   :  { %1168 = vmatmul.f32.gmra.mxu0 %v1805_v42  ;;  %v787_v39 = vadd.f32 %v786_v35, %v1856_v37 }
 0x107   :  { %v824_v33 = vpop.f32.mrf.mxu3  ;;  %v862_v60 = vpop.f32.mrf.mxu0 }
 0x108   :  { %1409 = vmatmul.msk.f32.gmra.mxu1 %vm656_vm0, %v1845_v51  ;;  %v825_v20 = vadd.f32 %v824_v33, %v787_v39 }
 0x10a   :  { %v863_v45 = vadd.f32 %v862_v60, %v825_v20 }
 0x10b   :  { %v900_v36 = vpop.f32.mrf.mxu1 }
 0x10c   :  { %v901_v14 = vadd.f32 %v900_v36, %v863_v45 }
 0x10d   :  { %v789_v49 = vpop.f32.mrf.mxu2 }
 0x10e   :  { %v790_v62 = vadd.f32 %v789_v49, %v1863_v32 }
 0x110   :  { %v827_v41 = vpop.f32.mrf.mxu3 }
 0x111   :  { %v865_v48 = vpop.f32.mrf.mxu0  ;;  %v828_v25 = vadd.f32 %v827_v41, %v790_v62 }
 0x113   :  { %v866_v42 = vadd.f32 %v865_v48, %v828_v25 }
 0x114   :  { %v903_v54 = vpop.f32.mrf.mxu1 }
 0x115   :  { %v904_v29 = vadd.f32 %v903_v54, %v866_v42  ;;  %v923_v6 = vpop.f32.mrf.mxu2 }
 0x116   :  { %v1901_v37 = vadd.f32 %v923_v6, %v1874_v13 }
 0x118   :  { %v1239_v32 = vmul.f32 %v1901_v37, %v1901_v37 }
 0x11a   :  { %v961_v51 = vpop.f32.mrf.mxu3  ;;  %v999_v59 = vpop.f32.mrf.mxu0 }
 0x11b   :  { %v1000_v40 = vadd.f32 %v999_v59, %v961_v51 }
 0x11d   :  { %v1037_v19 = vpop.f32.mrf.mxu1 }
 0x11e   :  { %v1903_v24 = vadd.f32 %v1037_v19, %v1000_v40 }
 0x11f   :  { %v926_v1 = vpop.f32.mrf.mxu2 }
 0x120   :  { %v1905_v11 = vadd.f32 %v926_v1, %v889_v28 }
 0x122   :  { %v1210_v22 = vadd.f32 %v1905_v11, %v1901_v37  ;;  %v1241_v9 = vmul.f32 %v1905_v11, %v1905_v11  ;;  %v964_v0 = vpop.f32.mrf.mxu3  ;;  %v1002_v13 = vpop.f32.mrf.mxu0 }
 0x123   :  { %v1003_v21 = vadd.f32 %v1002_v13, %v964_v0 }
 0x124   :  { %v1253_v61 = vadd.f32 %v1241_v9, %v1239_v32 }
 0x125   :  { %v1040_v58 = vpop.f32.mrf.mxu1 }
 0x126   :  { %v1913_v50 = vadd.f32 %v1040_v58, %v1003_v21 }
 0x127   :  { %v929_v52 = vpop.f32.mrf.mxu2 }
 0x128   :  { %v1915_v44 = vadd.f32 %v929_v52, %v892_v53 }
 0x12a   :  { %v1211_v12 = vadd.f32 %v1210_v22, %v1915_v44  ;;  %v1243_v8 = vmul.f32 %v1915_v44, %v1915_v44  ;;  %v967_v55 = vpop.f32.mrf.mxu3  ;;  %v1005_v28 = vpop.f32.mrf.mxu0 }
 0x12b   :  { %v1006_v16 = vadd.f32 %v1005_v28, %v967_v55 }
 0x12c   :  { %v1254_v30 = vadd.f32 %v1253_v61, %v1243_v8 }
 0x12d   :  { %v1043_v63 = vpop.f32.mrf.mxu1 }
 0x12e   :  { %v1920_v46 = vadd.f32 %v1043_v63, %v1006_v16 }
 0x12f   :  { %v932_v43 = vpop.f32.mrf.mxu2 }
 0x130   :  { %v1922_v2 = vadd.f32 %v932_v43, %v895_v26 }
 0x132   :  { %v1212_v3 = vadd.f32 %v1211_v12, %v1922_v2  ;;  %v1245_v53 = vmul.f32 %v1922_v2, %v1922_v2  ;;  %v970_v38 = vpop.f32.mrf.mxu3  ;;  %v1008_v15 = vpop.f32.mrf.mxu0 }
 0x133   :  { %v1009_v18 = vadd.f32 %v1008_v15, %v970_v38 }
 0x134   :  { %v1255_v5 = vadd.f32 %v1254_v30, %v1245_v53 }
 0x135   :  { %v1046_v4 = vpop.f32.mrf.mxu1 }
 0x136   :  { %v1927_v7 = vadd.f32 %v1046_v4, %v1009_v18 }
 0x137   :  { %v935_v17 = vpop.f32.mrf.mxu2 }
 0x138   :  { %v1929_v34 = vadd.f32 %v935_v17, %v898_v27 }
 0x13a   :  { %v1213_v47 = vadd.f32 %v1212_v3, %v1929_v34  ;;  %v1247_v26 = vmul.f32 %v1929_v34, %v1929_v34  ;;  %v973_v23 = vpop.f32.mrf.mxu3  ;;  %v1011_v10 = vpop.f32.mrf.mxu0 }
 0x13c   :  { %v1256_v31 = vadd.f32 %v1255_v5, %v1247_v26  ;;  %v1012_v26 = vadd.f32 %v1011_v10, %v973_v23 }
 0x13d   :  { %v1049_v56 = vpop.f32.mrf.mxu1 }
 0x13f   :  { %v938_v57 = vpop.f32.mrf.mxu2 }
 0x140   :  { %v1934_v35 = vadd.f32 %v938_v57, %v901_v14 }
 0x142   :  { %v1214_v39 = vadd.f32 %v1213_v47, %v1934_v35  ;;  %v1249_v33 = vmul.f32 %v1934_v35, %v1934_v35  ;;  %v976_v60 = vpop.f32.mrf.mxu3  ;;  %v1014_v27 = vpop.f32.mrf.mxu0 }
 0x144   :  { %v1257_v20 = vadd.f32 %v1256_v31, %v1249_v33 }
 0x145   :  { %v1052_v45 = vpop.f32.mrf.mxu1 }
 0x147   :  { %v941_v36 = vpop.f32.mrf.mxu2 }
 0x148   :  { %v1939_v49 = vadd.f32 %v941_v36, %v904_v29  ;;  %v1015_v36 = vadd.f32 %v1014_v27, %v976_v60 }
 0x14a   :  { %v1216_v62 = vsel %vm1215_vm1, %v1939_v49, 0.0  ;;  %v1251_v14 = vmul.f32 %v1939_v49, %v1939_v49  ;;  %v979_v41 = vpop.f32.mrf.mxu3  ;;  %v1017_v48 = vpop.f32.mrf.mxu0 }
 0x14b   :  { %v1217_v25 = vadd.f32 %v1216_v62, %v1214_v39 }
 0x14c   :  { %v1258_v42 = vsel %vm1215_vm1, %v1251_v14, 0.0 }
 0x14d   :  { %v1218_v54 = vrot.slane %v1217_v25, 4  ;;  %v1259_v6 = vadd.f32 %v1258_v42, %v1257_v20  ;;  %v1946_v51 = vpop.f32.mrf.mxu1  ;;  %v1050_v20 = vadd.f32 %v1049_v56, %v1012_v26 }
 0x14f   :  { %v1219_v59 = vadd.f32 %v1218_v54, %v1217_v25  ;;  %v1260_v40 = vrot.slane %v1259_v6, 4  ;;  %v1075_v19 = vpop.f32.mrf.mxu2 }
 0x150   :  { %v1076_v57 = vadd.f32 %v1075_v19, %v1903_v24 }
 0x151   :  { %v1220_v29 = vrot.slane %v1219_v59, 2  ;;  %v1261_v1 = vadd.f32 %v1260_v40, %v1259_v6 }
 0x152   :  { %v1113_v32 = vpop.f32.mrf.mxu3  ;;  %v1151_v22 = vpop.f32.mrf.mxu0 }
 0x153   :  { %v1221_v9 = vadd.f32 %v1220_v29, %v1219_v59  ;;  %v1262_v0 = vrot.slane %v1261_v1, 2  ;;  %v1114_v54 = vadd.f32 %v1113_v32, %v1076_v57  ;;  %v1053_v29 = vadd.f32 %v1052_v45, %v1015_v36 }
 0x155   :  { %v1222_v13 = vrot.slane %v1221_v9, 1  ;;  %v1263_v21 = vadd.f32 %v1262_v0, %v1261_v1  ;;  %v1189_v61 = vpop.f32.mrf.mxu1 }
 0x157   :  { %v1223_v58 = vadd.f32 %v1222_v13, %v1221_v9  ;;  %v1264_v52 = vrot.slane %v1263_v21, 1  ;;  %v1078_v12 = vpop.f32.mrf.mxu2 }
 0x158   :  { %v1079_v31 = vadd.f32 %v1078_v12, %v1913_v50  ;;  %v1152_v50 = vadd.f32 %v1151_v22, %v1114_v54 }
 0x159   :  { %v1948_v8 = vmul.f32 0.020408163, %v1223_v58  ;;  %v1265_v55 = vadd.f32 %v1264_v52, %v1263_v21 }
 0x15a   :  { %v1116_v28 = vpop.f32.mrf.mxu3  ;;  %v1154_v16 = vpop.f32.mrf.mxu0  ;;  %v1964_v0 = vadd.f32 %v1189_v61, %v1152_v50 }
 0x15b   :  { %v1950_v30 = vmul.f32 0.020408163, %v1265_v55  ;;  %v1954_v63 = vmul.f32 %v1948_v8, %v1948_v8  ;;  %v1117_v62 = vadd.f32 %v1116_v28, %v1079_v31 }
 0x15d   :  { %v1283_v43 = vsub.f32 %v1950_v30, %v1954_v63  ;;  %v1192_v3 = vpop.f32.mrf.mxu1  ;;  %v1155_v23 = vadd.f32 %v1154_v16, %v1117_v62 }
 0x15f   :  { %v1081_v53 = vpop.f32.mrf.mxu2  ;;  %v1962_v56 = vadd.f32 %v1192_v3, %v1155_v23 }
 0x160   :  { %v1082_v33 = vadd.f32 %v1081_v53, %v1920_v46  ;;  %v1018_v46 = vadd.f32 %v1017_v48, %v979_v41  ;;  %v1240_v48 = vmul.f32 %v1964_v0, %v1964_v0 }
 0x161   :  { %v1242_v22 = vmul.f32 %v1962_v56, %v1962_v56  ;;  %v1224_v61 = vadd.f32 %v1962_v56, %v1964_v0 }
 0x162   :  { %v1119_v38 = vpop.f32.mrf.mxu3  ;;  %v1157_v15 = vpop.f32.mrf.mxu0  ;;  %v1056_v58 = vadd.f32 %v1946_v51, %v1018_v46 }
 0x163   :  { %v1120_v6 = vadd.f32 %v1119_v38, %v1082_v33  ;;  %v1266_v51 = vadd.f32 %v1242_v22, %v1240_v48 }
 0x165   :  { %v1195_v18 = vpop.f32.mrf.mxu1  ;;  %v1158_v24 = vadd.f32 %v1157_v15, %v1120_v6 }
 0x167   :  { %v1084_v5 = vpop.f32.mrf.mxu2  ;;  %v1966_v13 = vadd.f32 %v1195_v18, %v1158_v24 }
 0x168   :  { %v1085_v14 = vadd.f32 %v1084_v5, %v1927_v7 }
 0x169   :  { %v1244_v55 = vmul.f32 %v1966_v13, %v1966_v13  ;;  %v1225_v3 = vadd.f32 %v1224_v61, %v1966_v13 }
 0x16a   :  { %v1122_v4 = vpop.f32.mrf.mxu3  ;;  %v1160_v17 = vpop.f32.mrf.mxu0 }
 0x16b   :  { %v1123_v10 = vadd.f32 %v1122_v4, %v1085_v14  ;;  %v1267_v4 = vadd.f32 %v1266_v51, %v1244_v55 }
 0x16d   :  { %v1198_v47 = vpop.f32.mrf.mxu1  ;;  %v1161_v60 = vadd.f32 %v1160_v17, %v1123_v10 }
 0x16f   :  { %v1087_v39 = vpop.f32.mrf.mxu2  ;;  %v1971_v52 = vadd.f32 %v1198_v47, %v1161_v60 }
 0x170   :  { %v1088_v59 = vadd.f32 %v1087_v39, %v1050_v20 }
 0x171   :  { %v1246_v53 = vmul.f32 %v1971_v52, %v1971_v52  ;;  %v1226_v17 = vadd.f32 %v1225_v3, %v1971_v52 }
 0x172   :  { %v1125_v25 = vpop.f32.mrf.mxu3  ;;  %v1163_v42 = vpop.f32.mrf.mxu0 }
 0x173   :  { %v1126_v19 = vadd.f32 %v1125_v25, %v1088_v59  ;;  %v1268_v57 = vadd.f32 %v1267_v4, %v1246_v53 }
 0x175   :  { %v1201_v40 = vpop.f32.mrf.mxu1  ;;  %v1164_v21 = vadd.f32 %v1163_v42, %v1126_v19 }
 0x177   :  { %v1090_v1 = vpop.f32.mrf.mxu2  ;;  %v1979_v28 = vadd.f32 %v1201_v40, %v1164_v21 }
 0x178   :  { %v1091_v9 = vadd.f32 %v1090_v1, %v1053_v29  ;;  %v1285_v1 = vadd.f32 0.001, %v1283_v43 }
 0x179   :  { %v1248_v47 = vmul.f32 %v1979_v28, %v1979_v28  ;;  %v1227_v39 = vadd.f32 %v1226_v17, %v1979_v28 }
 0x17a   :  { %v1128_v27 = vpop.f32.mrf.mxu3  ;;  %v1166_v7 = vpop.f32.mrf.mxu0  ;;  %1452 = vrsqrt.f32 %v1285_v1  ;;  %vm1293_vm6 = vweird.f32 %v1285_v1 }
 0x17b   :  { %v1129_v32 = vadd.f32 %v1128_v27, %v1091_v9  ;;  %v1269_v36 = vadd.f32 %v1268_v57, %v1248_v47 }
 0x17d   :  { %v1204_v45 = vpop.f32.mrf.mxu1  ;;  %v1167_v41 = vadd.f32 %v1166_v7, %v1129_v32 }
 0x17f   :  { %v1093_v12 = vpop.f32.mrf.mxu2  ;;  %v1984_v38 = vadd.f32 %v1204_v45, %v1167_v41 }
 0x180   :  { %v1094_v16 = vadd.f32 %v1093_v12, %v1056_v58  ;;  %v1453_v58 = vpop.eup %1452 }
 0x181   :  { %v1250_v33 = vmul.f32 %v1984_v38, %v1984_v38  ;;  %v1228_v62 = vadd.f32 %v1227_v39, %v1984_v38  ;;  %v1288_v48 = vmul.f32 %v1453_v58, %v1285_v1  ;;  %vm1294_vm3 = vweird.f32 %v1453_v58 }
 0x182   :  { %v1131_v15 = vpop.f32.mrf.mxu3  ;;  %v1169_v18 = vpop.f32.mrf.mxu0  ;;  %vm1295_vm7 = vmor %vm1293_vm6, %vm1294_vm3 }
 0x183   :  { %v1132_v5 = vadd.f32 %v1131_v15, %v1094_v16  ;;  %v1270_v42 = vadd.f32 %v1269_v36, %v1250_v33  ;;  %v1289_v12 = vmul.f32 %v1453_v58, %v1288_v48 }
 0x185   :  { %v1170_v26 = vadd.f32 %v1169_v18, %v1132_v5  ;;  %v1207_v31 = vpop.f32.mrf.mxu1  ;;  %v1290_v30 = vmul.f32 0.5, %v1289_v12  ;;  %v1307_v18 = vld [vmem:[%s2037_s5] sm:$0x3]  ;;  %s1617_s5 = smov [#allocation11]  }
 0x187   :  { %v1992_v20 = vadd.f32 %v1207_v31, %v1170_v26  ;;  %v1291_v55 = vsub.f32 1.5, %v1290_v30 }
 0x189   :  { %v1229_v14 = vsel %vm1215_vm1, %v1992_v20, 0.0  ;;  %v1252_v25 = vmul.f32 %v1992_v20, %v1992_v20  ;;  %v1292_v3 = vmul.f32 %v1453_v58, %v1291_v55 }
 0x18a   :  { %v1230_v54 = vadd.f32 %v1229_v14, %v1228_v62  ;;  %v1314_v14 = vld [vmem:[%s2038_s6] sm:$0x3]  ;;  %s1379_s6 = sshll.u32 %s1617_s5, 4  ;;  %s1380_s6 = int_to_ptr.vmem [resolvable:$true] %s1379_s6 }
 0x18b   :  { %v1271_v6 = vsel %vm1215_vm1, %v1252_v25, 0.0  ;;  %v1296_v4 = vsel %vm1295_vm7, %v1453_v58, %v1292_v3 }
 0x18c   :  { %v1231_v59 = vrot.slane %v1230_v54, 4  ;;  %v1272_v40 = vadd.f32 %v1271_v6, %v1270_v42 }
 0x18e   :  { %v1232_v29 = vadd.f32 %v1231_v59, %v1230_v54  ;;  %v1273_v23 = vrot.slane %v1272_v40, 4 }
 0x190   :  { %v1233_v10 = vrot.slane %v1232_v29, 2  ;;  %v1274_v50 = vadd.f32 %v1273_v23, %v1272_v40 }
 0x192   :  { %v1234_v24 = vadd.f32 %v1233_v10, %v1232_v29  ;;  %v1275_v19 = vrot.slane %v1274_v50, 2 }
 0x194   :  { %v1235_v9 = vrot.slane %v1234_v24, 1  ;;  %v1276_v46 = vadd.f32 %v1275_v19, %v1274_v50 }
 0x196   :  { %v1236_v60 = vadd.f32 %v1235_v9, %v1234_v24  ;;  %v1277_v27 = vrot.slane %v1276_v46, 1 }
 0x198   :  { %v1238_v7 = vmul.f32 0.020408163, %v1236_v60  ;;  %v1278_v32 = vadd.f32 %v1277_v27, %v1276_v46 }
 0x19a   :  { %v1280_v21 = vmul.f32 0.020408163, %v1278_v32  ;;  %v1282_v45 = vmul.f32 %v1238_v7, %v1238_v7 }
 0x19c   :  { %v1284_v22 = vsub.f32 %v1280_v21, %v1282_v45 }
 0x19e   :  { %v1286_v41 = vadd.f32 0.001, %v1284_v22 }
 0x1a0   :  { %1454 = vrsqrt.f32 %v1286_v41  ;;  %vm1303_vm4 = vweird.f32 %v1286_v41 }
 0x1a6   :  { %v1455_v61 = vpop.eup %1454 }
 0x1a7   :  { %v1298_v63 = vmul.f32 %v1455_v61, %v1286_v41  ;;  %vm1304_vm2 = vweird.f32 %v1455_v61 }
 0x1a8   :  { %vm1305_vm5 = vmor %vm1303_vm4, %vm1304_vm2 }
 0x1a9   :  { %v1299_v43 = vmul.f32 %v1455_v61, %v1298_v63 }
 0x1ab   :  { %v1300_v16 = vmul.f32 0.5, %v1299_v43 }
 0x1ad   :  { %v1301_v51 = vsub.f32 1.5, %v1300_v16 }
 0x1af   :  { %v1302_v53 = vmul.f32 %v1455_v61, %v1301_v51 }
 0x1b1   :  { %v1306_v15 = vsel %vm1305_vm5, %v1455_v61, %v1302_v53 }
 0x1b2   :  { %v1310_v5 = vrot.slane %v1306_v15, 7 }
 0x1b4   :  { %v1311_v17 = vsel %vm1215_vm1, %v1296_v4, %v1310_v5 }
 0x1b5   :  { %v1313_v47 = vmul.f32 %v1311_v17, %v1307_v18 }
 0x1b7   :  { %v1316_v26 = vperm.slane %v1313_v47, 0  ;;  %v1317_v31 = vperm.slane %v1313_v47, 1 }
 0x1b9   :  { %v1320_v57 = vmul.f32 %v1316_v26, %v1948_v8  ;;  %v1321_v39 = vmul.f32 %v1317_v31, %v1238_v7  ;;  %v1328_v33 = vmul.f32 %v1316_v26, %v1901_v37  ;;  %v1330_v36 = vmul.f32 %v1316_v26, %v1905_v11 }
 0x1ba   :  { %v1332_v62 = vmul.f32 %v1316_v26, %v1915_v44  ;;  %v1334_v42 = vmul.f32 %v1316_v26, %v1922_v2  ;;  %v1336_v54 = vmul.f32 %v1316_v26, %v1929_v34  ;;  %v1338_v6 = vmul.f32 %v1316_v26, %v1934_v35 }
 0x1bb   :  { %v1324_v25 = vrot.slane %v1321_v39, 7  ;;  %v1339_v8 = vmul.f32 %v1317_v31, %v1984_v38  ;;  %v1341_v37 = vmul.f32 %v1317_v31, %v1992_v20  ;;  %v1329_v44 = vmul.f32 %v1317_v31, %v1964_v0 }
 0x1bc   :  { %v1331_v40 = vmul.f32 %v1317_v31, %v1962_v56  ;;  %v1333_v10 = vmul.f32 %v1317_v31, %v1966_v13  ;;  %v1335_v2 = vmul.f32 %v1317_v31, %v1971_v52  ;;  %v1337_v34 = vmul.f32 %v1317_v31, %v1979_v28 }
 0x1bd   :  { %v1325_v59 = vsel %vm1215_vm1, %v1320_v57, %v1324_v25  ;;  %v1340_v35 = vmul.f32 %v1316_v26, %v1939_v49 }
 0x1be   :  { %v1327_v11 = vsub.f32 %v1314_v14, %v1325_v59 }
 0x1c0   :  { %v1343_v29 = vperm.slane %v1327_v11, 0  ;;  %v1344_v23 = vperm.slane %v1327_v11, 1 }
 0x1c2   :  { %v1347_v38 = vadd.f32 %v1343_v29, %v1328_v33  ;;  %v1348_v50 = vadd.f32 %v1344_v23, %v1329_v44  ;;  %v1349_v1 = vadd.f32 %v1343_v29, %v1330_v36  ;;  %v1350_v24 = vadd.f32 %v1344_v23, %v1331_v40 }
 0x1c3   :  { %v1351_v20 = vadd.f32 %v1343_v29, %v1332_v62  ;;  %v1352_v19 = vadd.f32 %v1344_v23, %v1333_v10  ;;  %v1353_v9 = vadd.f32 %v1343_v29, %v1334_v42  ;;  %v1354_v0 = vadd.f32 %v1344_v23, %v1335_v2 }
 0x1c4   :  { %v1355_v46 = vadd.f32 %v1343_v29, %v1336_v54  ;;  %v1356_v56 = vadd.f32 %v1344_v23, %v1337_v34  ;;  %v1357_v60 = vadd.f32 %v1343_v29, %v1338_v6  ;;  %v1358_v27 = vadd.f32 %v1344_v23, %v1339_v8  ;;  %1361 = vst [vmem:[#allocation11] sm:$0xff] %v1347_v38 }
 0x1c5   :  { %v1359_v13 = vadd.f32 %v1343_v29, %v1340_v35  ;;  %v1360_v7 = vadd.f32 %v1344_v23, %v1341_v37  ;;  %1362 = vst [vmem:[#allocation11 + $0x8] sm:$0xff] %v1348_v50 }
 0x1c6   :  { %1363 = vst [vmem:[#allocation11 + $0x10] sm:$0xff] %v1349_v1 }
 0x1c7   :  { %1364 = vst [vmem:[#allocation11 + $0x18] sm:$0xff] %v1350_v24 }
 0x1c8   :  { %1365 = vst [vmem:[#allocation11 + $0x20] sm:$0xff] %v1351_v20 }
 0x1c9   :  { %1366 = vst [vmem:[#allocation11 + $0x28] sm:$0xff] %v1352_v19 }
 0x1ca   :  { %1367 = vst [vmem:[#allocation11 + $0x30] sm:$0xff] %v1353_v9 }
 0x1cb   :  { %1368 = vst [vmem:[#allocation11 + $0x38] sm:$0xff] %v1354_v0 }
 0x1cc   :  { %1369 = vst [vmem:[#allocation11 + $0x40] sm:$0xff] %v1355_v46 }
 0x1cd   :  { %1370 = vst [vmem:[#allocation11 + $0x48] sm:$0xff] %v1356_v56 }
 0x1ce   :  { %1371 = vst [vmem:[#allocation11 + $0x50] sm:$0xff] %v1357_v60 }
 0x1cf   :  { %1372 = vst [vmem:[#allocation11 + $0x58] sm:$0xff] %v1358_v27 }
 0x1d0   :  { %1373 = vst [vmem:[#allocation11 + $0x60] sm:$0x1] %v1359_v13 }
 0x1d1   :  { %1374 = vst [vmem:[#allocation11 + $0x68] sm:$0x1] %v1360_v7 }
 0x1d2   :  { %1387 = dma.vmem_to_hbm [thread:$0]  %s1380_s6, 1792, %s1382_s8, [#allocation4], %s1615_s25, %s1615_s25, %s1616_s26  }
 0x1d3   :  { %1606 = dma.done.wait [#allocation4], 1792  }
 0x1d4   :  { %1607 = vsyncadd [#allocation4], 4294965504 }
 0x1d5   :  { %1392 = vsyncpa [#allocation3], 1 }
 0x1d6   :  { %1393 = vsyncpa [#allocation6], 1 }
 0x1d7   :  { %1394 = vsyncpa [#allocation9], 1 }
 0x1d8   :  { %1395 = vsyncpa [#allocation4], 1 }

</bundles_post_ra>
